<compile_context>
chip_gen: v6e
topology: v6e:2x2x1
jax: 0.10.0
libtpu: 0.0.40
codegen_flags: <defaults>
</compile_context>

<pallas_src>
import math
from functools import partial

import jax
import jax.numpy as jnp
from jax.experimental import pallas as pl
from jax.experimental.pallas import tpu as pltpu


# ---------------- Pallas kernels ----------------

def deconv_mm_stats_kernel(x_ref, w_ref, y_ref, sum_ref, sq_ref):
    # (tile_m, Cin) @ (Cin, KH*KW*Cout) -> (tile_m, KH*KW*Cout) on the MXU.
    y = jnp.dot(x_ref[...], w_ref[...], preferred_element_type=jnp.float32)
    y_ref[...] = y

    # Fused BN statistics: per-sublane partial sums (pure VPU adds across vreg
    # groups; the final cross-sublane reduce happens on a tiny tensor in XLA).
    tm, kc = y.shape
    y3 = y.reshape(tm // 8, 8, kc)
    sum_ref[...] = jnp.sum(y3, axis=0)[None]          # (1, 8, KC)
    sq_ref[...] = jnp.sum(y3 * y3, axis=0)[None]      # (1, 8, KC)


def bn_relu_kernel(y_ref, scale_ref, shift_ref, o_ref):
    # y * scale + shift, ReLU — operates on the un-scattered Y_flat layout.
    o_ref[...] = jnp.maximum(y_ref[...] * scale_ref[...] + shift_ref[...], 0.0)


# ---------------- Helpers ----------------

def _pick_tile(m, target):
    """Largest multiple-of-8 divisor of m that is <= target (falls back to m)."""
    target = min(target, m)
    for t in range(target, 7, -1):
        if m % t == 0 and t % 8 == 0:
            return t
    return m


# ---------------- Wrapper ----------------

@partial(jax.jit, static_argnames=("out_layer", "tile_m"))
def deconv_block_5x5(x, weight, gamma, beta, *, out_layer=False, eps=1e-5, tile_m=1024):
    """Forward of deConvBlock5x5: ConvTranspose2d(k=2, s=2, bias=False) [+ BN + ReLU]."""
    N, Cin, H, W = x.shape
    Cin_w, Cout, KH, KW = weight.shape
    assert Cin_w == Cin and (KH, KW) == (2, 2)

    M = N * H * W
    KC = KH * KW * Cout
    assert M % 8 == 0, "N*H*W must be a multiple of 8 (sublane packing)"
    # TODO(synk): ragged last tile (M not divisible by 8) would need cdiv grid + masking.

    tm = _pick_tile(M, tile_m)
    num_tiles = M // tm

    # Glue (small tensors): flatten pixels and reorder the deconv weight so that
    # y_flat column index = kh*(KW*Cout) + kw*Cout + co  (channel innermost).
    x_flat = jnp.transpose(x, (0, 2, 3, 1)).reshape(M, Cin)
    w2 = jnp.transpose(weight, (0, 2, 3, 1)).reshape(Cin, KC)

    vmem_limit = 64 * 1024 * 1024
    mm_cost = pl.CostEstimate(
        flops=2 * M * Cin * KC,
        transcendentals=0,
        bytes_accessed=(M * Cin + Cin * KC + M * KC + 2 * num_tiles * 8 * KC) * 4,
    )

    y_flat, sum_p, sq_p = pl.pallas_call(
        deconv_mm_stats_kernel,
        out_shape=(
            jax.ShapeDtypeStruct((M, KC), jnp.float32),
            jax.ShapeDtypeStruct((num_tiles, 8, KC), jnp.float32),
            jax.ShapeDtypeStruct((num_tiles, 8, KC), jnp.float32),
        ),
        grid_spec=pltpu.PrefetchScalarGridSpec(
            num_scalar_prefetch=0,
            grid=(num_tiles,),
            in_specs=[
                pl.BlockSpec((tm, Cin), lambda i: (i, 0)),
                pl.BlockSpec((Cin, KC), lambda i: (0, 0)),
            ],
            out_specs=(
                pl.BlockSpec((tm, KC), lambda i: (i, 0)),
                pl.BlockSpec((1, 8, KC), lambda i: (i, 0, 0)),
                pl.BlockSpec((1, 8, KC), lambda i: (i, 0, 0)),
            ),
        ),
        compiler_params=pltpu.CompilerParams(
            dimension_semantics=("parallel",),
            vmem_limit_bytes=vmem_limit,
        ),
        cost_estimate=mm_cost,
    )(x_flat, w2)

    if out_layer:
        # Single combined patch-scatter + NCHW permute.
        y = y_flat.reshape(N, H, W, KH, KW, Cout)
        return jnp.transpose(y, (0, 5, 1, 3, 2, 4)).reshape(N, Cout, H * KH, W * KW)

    # ---- BatchNorm (training-mode batch statistics; running-stat updates are a
    # training side effect and do not affect the forward output) ----
    M2 = M * KH * KW
    sums_kc = jnp.sum(sum_p, axis=(0, 1))                    # (KC,)
    sqs_kc = jnp.sum(sq_p, axis=(0, 1))                      # (KC,)
    sums_c = sums_kc.reshape(KH * KW, Cout).sum(axis=0)      # (Cout,)
    sqs_c = sqs_kc.reshape(KH * KW, Cout).sum(axis=0)        # (Cout,)
    cnt = jnp.float32(M2)
    mean = sums_c / cnt
    # E[y^2] - E[y]^2 in f32, clamped at 0 to guard against cancellation.
    var = jnp.maximum(sqs_c / cnt - mean * mean, 0.0)
    scale_c = gamma / jnp.sqrt(var + eps)
    shift_c = beta - mean * scale_c
    # Tile per-channel scale/shift over the 4 kernel positions to match y_flat columns.
    scale_kc = jnp.tile(scale_c, KH * KW).reshape(1, KC)
    shift_kc = jnp.tile(shift_c, KH * KW).reshape(1, KC)

    bn_cost = pl.CostEstimate(
        flops=2 * M * KC,
        transcendentals=0,
        bytes_accessed=2 * M * KC * 4,
    )

    out_flat = pl.pallas_call(
        bn_relu_kernel,
        out_shape=jax.ShapeDtypeStruct((M, KC), jnp.float32),
        grid_spec=pltpu.PrefetchScalarGridSpec(
            num_scalar_prefetch=0,
            grid=(num_tiles,),
            in_specs=[
                pl.BlockSpec((tm, KC), lambda i: (i, 0)),
                pl.BlockSpec((1, KC), lambda i: (0, 0)),
                pl.BlockSpec((1, KC), lambda i: (0, 0)),
            ],
            out_specs=pl.BlockSpec((tm, KC), lambda i: (i, 0)),
        ),
        compiler_params=pltpu.CompilerParams(
            dimension_semantics=("parallel",),
            vmem_limit_bytes=vmem_limit,
        ),
        cost_estimate=bn_cost,
    )(y_flat, scale_kc, shift_kc)

    # Single combined patch-scatter + NCHW permute (only layout pass left).
    out = out_flat.reshape(N, H, W, KH, KW, Cout)
    return jnp.transpose(out, (0, 5, 1, 3, 2, 4)).reshape(N, Cout, H * KH, W * KW)


# ---------------- Pure-JAX references (for sanity check) ----------------

def reference_deconv(x, weight):
    N, Cin, H, W = x.shape
    _, Cout, KH, KW = weight.shape
    # y[n, co, 2h+kh, 2w+kw] = sum_ci x[n, ci, h, w] * W[ci, co, kh, kw]
    y = jnp.einsum("nihw,iokl->nhkwlo", x, weight)           # (N,H,KH,W,KW,Cout)
    y = y.reshape(N, H * KH, W * KW, Cout)
    return jnp.transpose(y, (0, 3, 1, 2))                    # NCHW


def reference_forward(x, weight, gamma, beta, eps=1e-5):
    _, Cout, _, _ = weight.shape
    y = reference_deconv(x, weight)
    mean = jnp.mean(y, axis=(0, 2, 3), keepdims=True)
    var = jnp.mean((y - mean) ** 2, axis=(0, 2, 3), keepdims=True)
    yn = (y - mean) / jnp.sqrt(var + eps)
    yn = yn * gamma.reshape(1, Cout, 1, 1) + beta.reshape(1, Cout, 1, 1)
    return jnp.maximum(yn, 0.0)


if __name__ == "__main__":
    N, Cin, Cout, H, W = 2, 4, 8, 16, 16
    KH = KW = 2

    key = jax.random.PRNGKey(0)
    kx, kw_ = jax.random.split(key)

    # Deterministic xavier_uniform for the ConvTranspose2d weight (Cin, Cout, 2, 2),
    # matching torch's fan computation on this weight shape.
    fan_in = Cout * KH * KW
    fan_out = Cin * KH * KW
    bound = (6.0 / (fan_in + fan_out)) ** 0.5
    weight = jax.random.uniform(kw_, (Cin, Cout, KH, KW), jnp.float32, -bound, bound)

    gamma = jnp.ones((Cout,), jnp.float32)   # bn.weight
    beta = jnp.zeros((Cout,), jnp.float32)   # bn.bias

    x = jax.random.normal(kx, (N, Cin, H, W), jnp.float32)

    # Main path: deconv + BN + ReLU
    out = deconv_block_5x5(x, weight, gamma, beta, out_layer=False)
    out = jax.block_until_ready(out)
    ref = reference_forward(x, weight, gamma, beta)
    assert out.shape == (N, Cout, 2 * H, 2 * W)
    assert jnp.allclose(out, ref, atol=1e-4, rtol=1e-4)

    # out_layer path: deconv only
    out2 = deconv_block_5x5(x, weight, gamma, beta, out_layer=True)
    out2 = jax.block_until_ready(out2)
    ref2 = reference_deconv(x, weight)
    assert jnp.allclose(out2, ref2, atol=1e-4, rtol=1e-4)

    print("KERNEL_OK")
</pallas_src>

<mosaic_0001>
module attributes {stable_mosaic.version = 11 : i64} {
  func.func @deconv_mm_stats_kernel(%arg0: i32, %arg1: memref<512x4xf32, #tpu.memory_space<vmem>>, %arg2: memref<4x32xf32, #tpu.memory_space<vmem>>, %arg3: memref<512x32xf32, #tpu.memory_space<vmem>>, %arg4: memref<1x8x32xf32, #tpu.memory_space<vmem>>, %arg5: memref<1x8x32xf32, #tpu.memory_space<vmem>>) attributes {dimension_semantics = [#tpu.dimension_semantics<parallel>], iteration_bounds = array<i64: 1>, scalar_prefetch = 0 : i64, scratch_operands = 0 : i64, tpu.core_type = #tpu.core_type<tc>, window_params = [{transform_indices = @transform_0, window_bounds = array<i64: 512, 4>}, {pipeline_mode = #tpu.pipeline_mode<synchronous>, transform_indices = @transform_1, window_bounds = array<i64: 4, 32>}, {transform_indices = @transform_2, window_bounds = array<i64: 512, 32>}, {transform_indices = @transform_3, window_bounds = array<i64: 1, 8, 32>}, {transform_indices = @transform_4, window_bounds = array<i64: 1, 8, 32>}]} {
    %c0 = arith.constant 0 : index
    %c0_0 = arith.constant 0 : index
    %0 = vector.load %arg1[%c0, %c0_0] : memref<512x4xf32, #tpu.memory_space<vmem>>, vector<512x4xf32>
    %c0_1 = arith.constant 0 : index
    %c0_2 = arith.constant 0 : index
    %1 = vector.load %arg2[%c0_1, %c0_2] : memref<4x32xf32, #tpu.memory_space<vmem>>, vector<4x32xf32>
    %cst = arith.constant dense<0.000000e+00> : vector<512x32xf32>
    %2 = tpu.matmul %0, %1, %cst {dimension_numbers = #tpu.dot_dimension_numbers<[1], [0], [0], [1], [0, 0, 1, 1], [], []>} : vector<512x4xf32>, vector<4x32xf32>, vector<512x32xf32> -> vector<512x32xf32>
    %c0_3 = arith.constant 0 : index
    %c0_4 = arith.constant 0 : index
    %3 = vector.load %arg3[%c0_3, %c0_4] : memref<512x32xf32, #tpu.memory_space<vmem>>, vector<512x32xf32>
    tpu.vector_store %arg3[%c0_3, %c0_4], %2 {strides = array<i32>} : memref<512x32xf32, #tpu.memory_space<vmem>>, vector<512x32xf32>,
    %4 = vector.shape_cast %2 : vector<512x32xf32> to vector<64x8x32xf32>
    %cst_5 = arith.constant dense<0.000000e+00> : vector<8x32xf32>
    %5 = vector.multi_reduction <add>, %4, %cst_5 [0] : vector<64x8x32xf32> to vector<8x32xf32>
    %6 = vector.shape_cast %5 : vector<8x32xf32> to vector<1x8x32xf32>
    %c0_6 = arith.constant 0 : index
    %c0_7 = arith.constant 0 : index
    %c0_8 = arith.constant 0 : index
    %7 = vector.load %arg4[%c0_6, %c0_7, %c0_8] : memref<1x8x32xf32, #tpu.memory_space<vmem>>, vector<1x8x32xf32>
    tpu.vector_store %arg4[%c0_6, %c0_7, %c0_8], %6 {strides = array<i32>} : memref<1x8x32xf32, #tpu.memory_space<vmem>>, vector<1x8x32xf32>,
    %8 = arith.mulf %4, %4 : vector<64x8x32xf32>
    %cst_9 = arith.constant dense<0.000000e+00> : vector<8x32xf32>
    %9 = vector.multi_reduction <add>, %8, %cst_9 [0] : vector<64x8x32xf32> to vector<8x32xf32>
    %10 = vector.shape_cast %9 : vector<8x32xf32> to vector<1x8x32xf32>
    %c0_10 = arith.constant 0 : index
    %c0_11 = arith.constant 0 : index
    %c0_12 = arith.constant 0 : index
    %11 = vector.load %arg5[%c0_10, %c0_11, %c0_12] : memref<1x8x32xf32, #tpu.memory_space<vmem>>, vector<1x8x32xf32>
    tpu.vector_store %arg5[%c0_10, %c0_11, %c0_12], %10 {strides = array<i32>} : memref<1x8x32xf32, #tpu.memory_space<vmem>>, vector<1x8x32xf32>,
    return
  }
  func.func @transform_0(%arg0: i32) -> (i32, i32) {
    %c0_i32 = arith.constant 0 : i32
    %c0_i32_0 = arith.constant 0 : i32
    return %arg0, %c0_i32 : i32, i32
  }
  func.func @transform_1(%arg0: i32) -> (i32, i32) {
    %c0_i32 = arith.constant 0 : i32
    %c0_i32_0 = arith.constant 0 : i32
    %c0_i32_1 = arith.constant 0 : i32
    return %c0_i32, %c0_i32_0 : i32, i32
  }
  func.func @transform_2(%arg0: i32) -> (i32, i32) {
    %c0_i32 = arith.constant 0 : i32
    %c0_i32_0 = arith.constant 0 : i32
    return %arg0, %c0_i32 : i32, i32
  }
  func.func @transform_3(%arg0: i32) -> (i32, i32, i32) {
    %c0_i32 = arith.constant 0 : i32
    %c0_i32_0 = arith.constant 0 : i32
    %c0_i32_1 = arith.constant 0 : i32
    return %arg0, %c0_i32, %c0_i32_0 : i32, i32, i32
  }
  func.func @transform_4(%arg0: i32) -> (i32, i32, i32) {
    %c0_i32 = arith.constant 0 : i32
    %c0_i32_0 = arith.constant 0 : i32
    %c0_i32_1 = arith.constant 0 : i32
    return %arg0, %c0_i32, %c0_i32_0 : i32, i32, i32
  }
}

module attributes {stable_mosaic.version = 11 : i64} {
  func.func @bn_relu_kernel(%arg0: i32, %arg1: memref<512x32xf32, #tpu.memory_space<vmem>>, %arg2: memref<1x32xf32, #tpu.memory_space<vmem>>, %arg3: memref<1x32xf32, #tpu.memory_space<vmem>>, %arg4: memref<512x32xf32, #tpu.memory_space<vmem>>) attributes {dimension_semantics = [#tpu.dimension_semantics<parallel>], iteration_bounds = array<i64: 1>, scalar_prefetch = 0 : i64, scratch_operands = 0 : i64, tpu.core_type = #tpu.core_type<tc>, window_params = [{transform_indices = @transform_0, window_bounds = array<i64: 512, 32>}, {pipeline_mode = #tpu.pipeline_mode<synchronous>, transform_indices = @transform_1, window_bounds = array<i64: 1, 32>}, {pipeline_mode = #tpu.pipeline_mode<synchronous>, transform_indices = @transform_2, window_bounds = array<i64: 1, 32>}, {transform_indices = @transform_3, window_bounds = array<i64: 512, 32>}]} {
    %c0 = arith.constant 0 : index
    %c0_0 = arith.constant 0 : index
    %0 = vector.load %arg1[%c0, %c0_0] : memref<512x32xf32, #tpu.memory_space<vmem>>, vector<512x32xf32>
    %c0_1 = arith.constant 0 : index
    %c0_2 = arith.constant 0 : index
    %1 = vector.load %arg2[%c0_1, %c0_2] : memref<1x32xf32, #tpu.memory_space<vmem>>, vector<1x32xf32>
    %2 = vector.broadcast %1 : vector<1x32xf32> to vector<512x32xf32>
    %3 = arith.mulf %0, %2 : vector<512x32xf32>
    %c0_3 = arith.constant 0 : index
    %c0_4 = arith.constant 0 : index
    %4 = vector.load %arg3[%c0_3, %c0_4] : memref<1x32xf32, #tpu.memory_space<vmem>>, vector<1x32xf32>
    %5 = vector.broadcast %4 : vector<1x32xf32> to vector<512x32xf32>
    %6 = arith.addf %3, %5 : vector<512x32xf32>
    %cst = arith.constant 0.000000e+00 : f32
    %7 = vector.broadcast %cst : f32 to vector<512x32xf32>
    %8 = arith.maximumf %6, %7 : vector<512x32xf32>
    %c0_5 = arith.constant 0 : index
    %c0_6 = arith.constant 0 : index
    %9 = vector.load %arg4[%c0_5, %c0_6] : memref<512x32xf32, #tpu.memory_space<vmem>>, vector<512x32xf32>
    tpu.vector_store %arg4[%c0_5, %c0_6], %8 {strides = array<i32>} : memref<512x32xf32, #tpu.memory_space<vmem>>, vector<512x32xf32>,
    return
  }
  func.func @transform_0(%arg0: i32) -> (i32, i32) {
    %c0_i32 = arith.constant 0 : i32
    %c0_i32_0 = arith.constant 0 : i32
    return %arg0, %c0_i32 : i32, i32
  }
  func.func @transform_1(%arg0: i32) -> (i32, i32) {
    %c0_i32 = arith.constant 0 : i32
    %c0_i32_0 = arith.constant 0 : i32
    %c0_i32_1 = arith.constant 0 : i32
    return %c0_i32, %c0_i32_0 : i32, i32
  }
  func.func @transform_2(%arg0: i32) -> (i32, i32) {
    %c0_i32 = arith.constant 0 : i32
    %c0_i32_0 = arith.constant 0 : i32
    %c0_i32_1 = arith.constant 0 : i32
    return %c0_i32, %c0_i32_0 : i32, i32
  }
  func.func @transform_3(%arg0: i32) -> (i32, i32) {
    %c0_i32 = arith.constant 0 : i32
    %c0_i32_0 = arith.constant 0 : i32
    return %arg0, %c0_i32 : i32, i32
  }
}

</mosaic_0001>

<bundles_post_ra>
// kernel: tile.18
= control target key start
LH: loop header
LB: loop body
LE: loop exit
PB: predicated region body
PF: predicated region fallthrough
CT: control target
= control target key end

     0   :  { %s22_s0 = inlined_call_operand.vmem [shape: f32[8], index: 0, kind: input, shape index: {}]   ;;  %s23_s1 = inlined_call_operand.vmem [shape: f32[4,8], index: 1, kind: output, shape index: {}]  }
   0x1   :  { %v4_v0 = vld [vmem:[%s22_s0] ss:$0 sm:$0xff] }
   0x2   :  { %5 = vst [vmem:[%s23_s1] sm:$0xf] %v4_v0 }

// kernel: tile.19
= control target key start
LH: loop header
LB: loop body
LE: loop exit
PB: predicated region body
PF: predicated region fallthrough
CT: control target
= control target key end

     0   :  { %vm8_vm0 = vcmask 64512   ;;  %s40_s8 = smov 8   ;;  %s41_s9 = smov 16   ;;  %vm14_vm1 = vcmask 261312   ;;  %vm20_vm2 = vcmask 195712   ;;  %vm26_vm3 = vcmask 130112   ;;  %s58_s0 = inlined_call_operand.vmem [shape: f32[4,8], index: 0, kind: input, shape index: {}]   ;;  %s59_s1 = inlined_call_operand.vmem [shape: f32[1,32], index: 1, kind: output, shape index: {}]  }
   0x1   :  { %v5_v0 = vld [vmem:[%s58_s0] sm:$0xf]  ;;  %s39_s0 = smov 24  }
   0x2   :  { %6 = vst [vmem:[#allocation1] sm:$0xf] %v5_v0 }
   0x9   :  { %v11_v1 = vld [vmem:[#allocation1 + $0x3] sm:$0x1]   ;;  %v23_v2 = vld [vmem:[#allocation1 + $0x1] sm:$0x1]   ;;  %v7_v3 = vld [vmem:[#allocation1] sm:$0x1]  }
   0xa   :  { %12 = vrot.lane.b32.xlu0 %v11_v1, %s39_s0  ;;  %24 = vrot.lane.b32.xlu1 %v23_v2, %s40_s8  ;;  %v17_v4 = vld [vmem:[#allocation1 + $0x2] sm:$0x1]   ;;  %9 = vst.msk [vmem:[#allocation0] sm:$0x1] %vm8_vm0, %v7_v3  }
   0xe   :  { %18 = vrot.lane.b32.xlu0 %v17_v4, %s41_s9 }
  0x7c   :  { %v13_v5 = vpop.permute.xlu0 %12   ;;  %v25_v6 = vpop.permute.xlu1 %24  }
  0x7d   :  { %15 = vst.msk [vmem:[#allocation0] sm:$0x1] %vm14_vm1, %v13_v5  }
  0x80   :  { %v19_v7 = vpop.permute.xlu0 %18  }
  0x81   :  { %21 = vst.msk [vmem:[#allocation0] sm:$0x1] %vm20_vm2, %v19_v7  }
  0x82   :  { %27 = vst.msk [vmem:[#allocation0] sm:$0x1] %vm26_vm3, %v25_v6  }
  0x89   :  { %v32_v8 = vld [vmem:[#allocation0] sm:$0x1] }
  0x8a   :  { %35 = vst [vmem:[%s59_s1] sm:$0x1] %v32_v8 }

// kernel: deconv_block_5x5.3
= control target key start
LH: loop header
LB: loop body
LE: loop exit
PB: predicated region body
PF: predicated region fallthrough
CT: control target
= control target key end

     0   :  { %vm284_vm0 = vcmask 261120   ;;  %s961_s0 = inlined_call_operand.vmem [shape: f32[512,32], index: 0, kind: input, shape index: {}]   ;;  %s962_s1 = inlined_call_operand.vmem [shape: f32[1,32], index: 1, kind: input, shape index: {}]   ;;  %s963_s2 = inlined_call_operand.vmem [shape: f32[1,32], index: 2, kind: input, shape index: {}]   ;;  %s964_s3 = inlined_call_operand.vmem [shape: f32[512,32], index: 3, kind: output, shape index: {}]  }
   0x1   :  { %v14_v0 = vld [vmem:[%s961_s0] sm:$0xff]  ;;  %v15_v4 = vld [vmem:[%s961_s0 + $0x8] sm:$0xff]  ;;  %v16_v5 = vld [vmem:[%s961_s0 + $0x10] sm:$0xff] }
   0x2   :  { %v381_v1 = vld [vmem:[%s962_s1] ss:$0 sm:$0xff]  ;;  %v17_v6 = vld [vmem:[%s961_s0 + $0x18] sm:$0xff]  ;;  %v19_v11 = vld [vmem:[%s961_s0 + $0x28] sm:$0xff] }
   0x3   :  { %v386_v2 = vld [vmem:[%s963_s2] ss:$0 sm:$0xff]  ;;  %v85_v3 = vmul.f32 %v381_v1, %v14_v0  ;;  %v86_v7 = vmul.f32 %v381_v1, %v15_v4  ;;  %v87_v8 = vmul.f32 %v381_v1, %v16_v5  ;;  %v88_v9 = vmul.f32 %v381_v1, %v17_v6  ;;  %v20_v12 = vld [vmem:[%s961_s0 + $0x30] sm:$0xff]  ;;  %v21_v17 = vld [vmem:[%s961_s0 + $0x38] sm:$0xff] }
   0x4   :  { %v18_v10 = vld [vmem:[%s961_s0 + $0x20] sm:$0xff]  ;;  %v90_v15 = vmul.f32 %v381_v1, %v19_v11  ;;  %v91_v16 = vmul.f32 %v381_v1, %v20_v12  ;;  %v92_v21 = vmul.f32 %v381_v1, %v21_v17  ;;  %v23_v27 = vld [vmem:[%s961_s0 + $0x48] sm:$0xff]  ;;  %v24_v28 = vld [vmem:[%s961_s0 + $0x50] sm:$0xff] }
   0x5   :  { %v156_v13 = vadd.f32 %v386_v2, %v85_v3  ;;  %v89_v14 = vmul.f32 %v381_v1, %v18_v10  ;;  %v157_v18 = vadd.f32 %v386_v2, %v86_v7  ;;  %v158_v19 = vadd.f32 %v386_v2, %v87_v8  ;;  %v22_v22 = vld [vmem:[%s961_s0 + $0x40] sm:$0xff]  ;;  %v25_v29 = vld [vmem:[%s961_s0 + $0x58] sm:$0xff]  ;;  %v27_v35 = vld [vmem:[%s961_s0 + $0x68] sm:$0xff] }
   0x6   :  { %v159_v20 = vadd.f32 %v386_v2, %v88_v9  ;;  %v161_v25 = vadd.f32 %v386_v2, %v90_v15  ;;  %v162_v26 = vadd.f32 %v386_v2, %v91_v16  ;;  %v163_v33 = vadd.f32 %v386_v2, %v92_v21  ;;  %v26_v34 = vld [vmem:[%s961_s0 + $0x60] sm:$0xff]  ;;  %v28_v36 = vld [vmem:[%s961_s0 + $0x70] sm:$0xff]  ;;  %v29_v41 = vld [vmem:[%s961_s0 + $0x78] sm:$0xff] }
   0x7   :  { %v220_v23 = vmax.f32 %v156_v13, 0.0  ;;  %v160_v24 = vadd.f32 %v386_v2, %v89_v14  ;;  %v221_v30 = vmax.f32 %v157_v18, 0.0  ;;  %v222_v31 = vmax.f32 %v158_v19, 0.0  ;;  %v30_v54 = vld [vmem:[%s961_s0 + $0x80] sm:$0xff]  ;;  %v31_v59 = vld [vmem:[%s961_s0 + $0x88] sm:$0xff]  ;;  %v32_v60 = vld [vmem:[%s961_s0 + $0x90] sm:$0xff] }
   0x8   :  { %v223_v32 = vmax.f32 %v159_v20, 0.0  ;;  %v225_v38 = vmax.f32 %v161_v25, 0.0  ;;  %v226_v39 = vmax.f32 %v162_v26, 0.0  ;;  %v93_v40 = vmul.f32 %v381_v1, %v22_v22  ;;  %v33_v61 = vld [vmem:[%s961_s0 + $0x98] sm:$0xff]  ;;  %v34_v4 = vld [vmem:[%s961_s0 + $0xa0] sm:$0xff]  ;;  %v35_v5 = vld [vmem:[%s961_s0 + $0xa8] sm:$0xff] }
   0x9   :  { %285 = vst.msk [vmem:[%s964_s3] sm:$0xff] %vm284_vm0, %v220_v23  ;;  %v224_v37 = vmax.f32 %v160_v24, 0.0  ;;  %286 = vst.msk [vmem:[%s964_s3 + $0x8] sm:$0xff] %vm284_vm0, %v221_v30  ;;  %v227_v42 = vmax.f32 %v163_v33, 0.0  ;;  %v94_v43 = vmul.f32 %v381_v1, %v23_v27  ;;  %v95_v44 = vmul.f32 %v381_v1, %v24_v28  ;;  %v36_v6 = vld [vmem:[%s961_s0 + $0xb0] sm:$0xff]  ;;  %v37_v11 = vld [vmem:[%s961_s0 + $0xb8] sm:$0xff] }
   0xa   :  { %287 = vst.msk [vmem:[%s964_s3 + $0x10] sm:$0xff] %vm284_vm0, %v222_v31  ;;  %288 = vst.msk [vmem:[%s964_s3 + $0x18] sm:$0xff] %vm284_vm0, %v223_v32  ;;  %v96_v45 = vmul.f32 %v381_v1, %v25_v29  ;;  %v164_v46 = vadd.f32 %v386_v2, %v93_v40  ;;  %v97_v47 = vmul.f32 %v381_v1, %v26_v34  ;;  %v38_v24 = vld [vmem:[%s961_s0 + $0xc0] sm:$0xff]  ;;  %v39_v29 = vld [vmem:[%s961_s0 + $0xc8] sm:$0xff] }
   0xb   :  { %289 = vst.msk [vmem:[%s964_s3 + $0x20] sm:$0xff] %vm284_vm0, %v224_v37  ;;  %290 = vst.msk [vmem:[%s964_s3 + $0x28] sm:$0xff] %vm284_vm0, %v225_v38  ;;  %v98_v48 = vmul.f32 %v381_v1, %v27_v35  ;;  %v99_v49 = vmul.f32 %v381_v1, %v28_v36  ;;  %v165_v50 = vadd.f32 %v386_v2, %v94_v43  ;;  %v40_v30 = vld [vmem:[%s961_s0 + $0xd0] sm:$0xff]  ;;  %v41_v31 = vld [vmem:[%s961_s0 + $0xd8] sm:$0xff] }
   0xc   :  { %291 = vst.msk [vmem:[%s964_s3 + $0x30] sm:$0xff] %vm284_vm0, %v226_v39  ;;  %292 = vst.msk [vmem:[%s964_s3 + $0x38] sm:$0xff] %vm284_vm0, %v227_v42  ;;  %v166_v51 = vadd.f32 %v386_v2, %v95_v44  ;;  %v167_v52 = vadd.f32 %v386_v2, %v96_v45  ;;  %v100_v53 = vmul.f32 %v381_v1, %v29_v41  ;;  %v228_v55 = vmax.f32 %v164_v46, 0.0  ;;  %v42_v36 = vld [vmem:[%s961_s0 + $0xe0] sm:$0xff]  ;;  %v43_v37 = vld [vmem:[%s961_s0 + $0xe8] sm:$0xff] }
   0xd   :  { %v168_v56 = vadd.f32 %v386_v2, %v97_v47  ;;  %v169_v57 = vadd.f32 %v386_v2, %v98_v48  ;;  %v170_v58 = vadd.f32 %v386_v2, %v99_v49  ;;  %v229_v62 = vmax.f32 %v165_v50, 0.0  ;;  %v44_v38 = vld [vmem:[%s961_s0 + $0xf0] sm:$0xff]  ;;  %v45_v43 = vld [vmem:[%s961_s0 + $0xf8] sm:$0xff] }
   0xe   :  { %v230_v63 = vmax.f32 %v166_v51, 0.0  ;;  %v231_v0 = vmax.f32 %v167_v52, 0.0  ;;  %v171_v3 = vadd.f32 %v386_v2, %v100_v53  ;;  %293 = vst.msk [vmem:[%s964_s3 + $0x40] sm:$0xff] %vm284_vm0, %v228_v55  ;;  %v101_v10 = vmul.f32 %v381_v1, %v30_v54 }
   0xf   :  { %v232_v7 = vmax.f32 %v168_v56, 0.0  ;;  %v233_v8 = vmax.f32 %v169_v57, 0.0  ;;  %v234_v9 = vmax.f32 %v170_v58, 0.0  ;;  %294 = vst.msk [vmem:[%s964_s3 + $0x48] sm:$0xff] %vm284_vm0, %v229_v62  ;;  %v102_v13 = vmul.f32 %v381_v1, %v31_v59  ;;  %v46_v56 = vld [vmem:[%s961_s0 + $0x100] sm:$0xff]  ;;  %v48_v62 = vld [vmem:[%s961_s0 + $0x110] sm:$0xff] }
  0x10   :  { %295 = vst.msk [vmem:[%s964_s3 + $0x50] sm:$0xff] %vm284_vm0, %v230_v63  ;;  %296 = vst.msk [vmem:[%s964_s3 + $0x58] sm:$0xff] %vm284_vm0, %v231_v0  ;;  %v235_v12 = vmax.f32 %v171_v3, 0.0  ;;  %v103_v14 = vmul.f32 %v381_v1, %v32_v60  ;;  %v104_v15 = vmul.f32 %v381_v1, %v33_v61  ;;  %v172_v16 = vadd.f32 %v386_v2, %v101_v10  ;;  %v47_v61 = vld [vmem:[%s961_s0 + $0x108] sm:$0xff]  ;;  %v49_v63 = vld [vmem:[%s961_s0 + $0x118] sm:$0xff] }
  0x11   :  { %297 = vst.msk [vmem:[%s964_s3 + $0x60] sm:$0xff] %vm284_vm0, %v232_v7  ;;  %298 = vst.msk [vmem:[%s964_s3 + $0x68] sm:$0xff] %vm284_vm0, %v233_v8  ;;  %v105_v17 = vmul.f32 %v381_v1, %v34_v4  ;;  %v106_v18 = vmul.f32 %v381_v1, %v35_v5  ;;  %v107_v19 = vmul.f32 %v381_v1, %v36_v6  ;;  %v50_v6 = vld [vmem:[%s961_s0 + $0x120] sm:$0xff]  ;;  %v51_v7 = vld [vmem:[%s961_s0 + $0x128] sm:$0xff] }
  0x12   :  { %299 = vst.msk [vmem:[%s964_s3 + $0x70] sm:$0xff] %vm284_vm0, %v234_v9  ;;  %300 = vst.msk [vmem:[%s964_s3 + $0x78] sm:$0xff] %vm284_vm0, %v235_v12  ;;  %v173_v20 = vadd.f32 %v386_v2, %v102_v13  ;;  %v174_v21 = vadd.f32 %v386_v2, %v103_v14  ;;  %v175_v22 = vadd.f32 %v386_v2, %v104_v15  ;;  %v236_v25 = vmax.f32 %v172_v16, 0.0  ;;  %v52_v8 = vld [vmem:[%s961_s0 + $0x130] sm:$0xff]  ;;  %v53_v13 = vld [vmem:[%s961_s0 + $0x138] sm:$0xff] }
  0x13   :  { %v108_v23 = vmul.f32 %v381_v1, %v37_v11  ;;  %v176_v26 = vadd.f32 %v386_v2, %v105_v17  ;;  %v177_v27 = vadd.f32 %v386_v2, %v106_v18  ;;  %v178_v28 = vadd.f32 %v386_v2, %v107_v19 }
  0x14   :  { %v237_v32 = vmax.f32 %v173_v20, 0.0  ;;  %v238_v33 = vmax.f32 %v174_v21, 0.0  ;;  %v239_v34 = vmax.f32 %v175_v22, 0.0  ;;  %301 = vst.msk [vmem:[%s964_s3 + $0x80] sm:$0xff] %vm284_vm0, %v236_v25  ;;  %v109_v42 = vmul.f32 %v381_v1, %v38_v24 }
  0x15   :  { %v179_v35 = vadd.f32 %v386_v2, %v108_v23  ;;  %v240_v39 = vmax.f32 %v176_v26, 0.0  ;;  %v241_v40 = vmax.f32 %v177_v27, 0.0  ;;  %v242_v41 = vmax.f32 %v178_v28, 0.0  ;;  %v54_v26 = vld [vmem:[%s961_s0 + $0x140] sm:$0xff] }
  0x16   :  { %302 = vst.msk [vmem:[%s964_s3 + $0x88] sm:$0xff] %vm284_vm0, %v237_v32  ;;  %303 = vst.msk [vmem:[%s964_s3 + $0x90] sm:$0xff] %vm284_vm0, %v238_v33  ;;  %v110_v45 = vmul.f32 %v381_v1, %v39_v29  ;;  %v111_v46 = vmul.f32 %v381_v1, %v40_v30  ;;  %v112_v47 = vmul.f32 %v381_v1, %v41_v31  ;;  %v55_v31 = vld [vmem:[%s961_s0 + $0x148] sm:$0xff]  ;;  %v56_v32 = vld [vmem:[%s961_s0 + $0x150] sm:$0xff] }
  0x17   :  { %304 = vst.msk [vmem:[%s964_s3 + $0x98] sm:$0xff] %vm284_vm0, %v239_v34  ;;  %v243_v44 = vmax.f32 %v179_v35, 0.0  ;;  %305 = vst.msk [vmem:[%s964_s3 + $0xa0] sm:$0xff] %vm284_vm0, %v240_v39  ;;  %v180_v48 = vadd.f32 %v386_v2, %v109_v42  ;;  %v113_v49 = vmul.f32 %v381_v1, %v42_v36  ;;  %v114_v50 = vmul.f32 %v381_v1, %v43_v37  ;;  %v57_v33 = vld [vmem:[%s961_s0 + $0x158] sm:$0xff]  ;;  %v59_v39 = vld [vmem:[%s961_s0 + $0x168] sm:$0xff] }
  0x18   :  { %306 = vst.msk [vmem:[%s964_s3 + $0xa8] sm:$0xff] %vm284_vm0, %v241_v40  ;;  %307 = vst.msk [vmem:[%s964_s3 + $0xb0] sm:$0xff] %vm284_vm0, %v242_v41  ;;  %v115_v51 = vmul.f32 %v381_v1, %v44_v38  ;;  %v181_v52 = vadd.f32 %v386_v2, %v110_v45  ;;  %v182_v53 = vadd.f32 %v386_v2, %v111_v46  ;;  %v58_v38 = vld [vmem:[%s961_s0 + $0x160] sm:$0xff]  ;;  %v60_v40 = vld [vmem:[%s961_s0 + $0x170] sm:$0xff] }
  0x19   :  { %308 = vst.msk [vmem:[%s964_s3 + $0xb8] sm:$0xff] %vm284_vm0, %v243_v44  ;;  %v183_v54 = vadd.f32 %v386_v2, %v112_v47  ;;  %v116_v55 = vmul.f32 %v381_v1, %v45_v43  ;;  %v244_v57 = vmax.f32 %v180_v48, 0.0  ;;  %v184_v58 = vadd.f32 %v386_v2, %v113_v49  ;;  %v61_v45 = vld [vmem:[%s961_s0 + $0x178] sm:$0xff] }
  0x1a   :  { %v185_v59 = vadd.f32 %v386_v2, %v114_v50  ;;  %v186_v60 = vadd.f32 %v386_v2, %v115_v51  ;;  %v245_v0 = vmax.f32 %v181_v52, 0.0  ;;  %v246_v3 = vmax.f32 %v182_v53, 0.0 }
  0x1b   :  { %v247_v4 = vmax.f32 %v183_v54, 0.0  ;;  %v187_v5 = vadd.f32 %v386_v2, %v116_v55  ;;  %309 = vst.msk [vmem:[%s964_s3 + $0xc0] sm:$0xff] %vm284_vm0, %v244_v57  ;;  %v248_v9 = vmax.f32 %v184_v58, 0.0  ;;  %v117_v12 = vmul.f32 %v381_v1, %v46_v56  ;;  %v62_v58 = vld [vmem:[%s961_s0 + $0x180] sm:$0xff] }
  0x1c   :  { %v249_v10 = vmax.f32 %v185_v59, 0.0  ;;  %v250_v11 = vmax.f32 %v186_v60, 0.0  ;;  %310 = vst.msk [vmem:[%s964_s3 + $0xc8] sm:$0xff] %vm284_vm0, %v245_v0  ;;  %311 = vst.msk [vmem:[%s964_s3 + $0xd0] sm:$0xff] %vm284_vm0, %v246_v3  ;;  %v118_v15 = vmul.f32 %v381_v1, %v47_v61  ;;  %v119_v16 = vmul.f32 %v381_v1, %v48_v62  ;;  %v64_v0 = vld [vmem:[%s961_s0 + $0x190] sm:$0xff]  ;;  %v65_v3 = vld [vmem:[%s961_s0 + $0x198] sm:$0xff] }
  0x1d   :  { %312 = vst.msk [vmem:[%s964_s3 + $0xd8] sm:$0xff] %vm284_vm0, %v247_v4  ;;  %v251_v14 = vmax.f32 %v187_v5, 0.0  ;;  %v120_v17 = vmul.f32 %v381_v1, %v49_v63  ;;  %313 = vst.msk [vmem:[%s964_s3 + $0xe0] sm:$0xff] %vm284_vm0, %v248_v9  ;;  %v188_v18 = vadd.f32 %v386_v2, %v117_v12  ;;  %v121_v19 = vmul.f32 %v381_v1, %v50_v6  ;;  %v63_v63 = vld [vmem:[%s961_s0 + $0x188] sm:$0xff] }
  0x1e   :  { %314 = vst.msk [vmem:[%s964_s3 + $0xe8] sm:$0xff] %vm284_vm0, %v249_v10  ;;  %315 = vst.msk [vmem:[%s964_s3 + $0xf0] sm:$0xff] %vm284_vm0, %v250_v11  ;;  %v122_v20 = vmul.f32 %v381_v1, %v51_v7  ;;  %v123_v21 = vmul.f32 %v381_v1, %v52_v8  ;;  %v189_v22 = vadd.f32 %v386_v2, %v118_v15  ;;  %v66_v8 = vld [vmem:[%s961_s0 + $0x1a0] sm:$0xff]  ;;  %v67_v9 = vld [vmem:[%s961_s0 + $0x1a8] sm:$0xff] }
  0x1f   :  { %316 = vst.msk [vmem:[%s964_s3 + $0xf8] sm:$0xff] %vm284_vm0, %v251_v14  ;;  %v190_v23 = vadd.f32 %v386_v2, %v119_v16  ;;  %v191_v24 = vadd.f32 %v386_v2, %v120_v17  ;;  %v124_v25 = vmul.f32 %v381_v1, %v53_v13  ;;  %v252_v27 = vmax.f32 %v188_v18, 0.0  ;;  %v68_v10 = vld [vmem:[%s961_s0 + $0x1b0] sm:$0xff]  ;;  %v69_v15 = vld [vmem:[%s961_s0 + $0x1b8] sm:$0xff] }
  0x20   :  { %v192_v28 = vadd.f32 %v386_v2, %v121_v19  ;;  %v193_v29 = vadd.f32 %v386_v2, %v122_v20  ;;  %v194_v30 = vadd.f32 %v386_v2, %v123_v21  ;;  %v253_v34 = vmax.f32 %v189_v22, 0.0 }
  0x21   :  { %v254_v35 = vmax.f32 %v190_v23, 0.0  ;;  %v255_v36 = vmax.f32 %v191_v24, 0.0  ;;  %v195_v37 = vadd.f32 %v386_v2, %v124_v25  ;;  %317 = vst.msk [vmem:[%s964_s3 + $0x100] sm:$0xff] %vm284_vm0, %v252_v27  ;;  %v125_v44 = vmul.f32 %v381_v1, %v54_v26 }
  0x22   :  { %v256_v41 = vmax.f32 %v192_v28, 0.0  ;;  %v257_v42 = vmax.f32 %v193_v29, 0.0  ;;  %v258_v43 = vmax.f32 %v194_v30, 0.0  ;;  %318 = vst.msk [vmem:[%s964_s3 + $0x108] sm:$0xff] %vm284_vm0, %v253_v34  ;;  %v126_v47 = vmul.f32 %v381_v1, %v55_v31  ;;  %v70_v28 = vld [vmem:[%s961_s0 + $0x1c0] sm:$0xff]  ;;  %v72_v34 = vld [vmem:[%s961_s0 + $0x1d0] sm:$0xff] }
  0x23   :  { %319 = vst.msk [vmem:[%s964_s3 + $0x110] sm:$0xff] %vm284_vm0, %v254_v35  ;;  %320 = vst.msk [vmem:[%s964_s3 + $0x118] sm:$0xff] %vm284_vm0, %v255_v36  ;;  %v259_v46 = vmax.f32 %v195_v37, 0.0  ;;  %v127_v48 = vmul.f32 %v381_v1, %v56_v32  ;;  %v128_v49 = vmul.f32 %v381_v1, %v57_v33  ;;  %v196_v50 = vadd.f32 %v386_v2, %v125_v44  ;;  %v71_v33 = vld [vmem:[%s961_s0 + $0x1c8] sm:$0xff]  ;;  %v73_v35 = vld [vmem:[%s961_s0 + $0x1d8] sm:$0xff] }
  0x24   :  { %321 = vst.msk [vmem:[%s964_s3 + $0x120] sm:$0xff] %vm284_vm0, %v256_v41  ;;  %322 = vst.msk [vmem:[%s964_s3 + $0x128] sm:$0xff] %vm284_vm0, %v257_v42  ;;  %v129_v51 = vmul.f32 %v381_v1, %v58_v38  ;;  %v130_v52 = vmul.f32 %v381_v1, %v59_v39  ;;  %v131_v53 = vmul.f32 %v381_v1, %v60_v40  ;;  %v74_v40 = vld [vmem:[%s961_s0 + $0x1e0] sm:$0xff]  ;;  %v75_v41 = vld [vmem:[%s961_s0 + $0x1e8] sm:$0xff] }
  0x25   :  { %323 = vst.msk [vmem:[%s964_s3 + $0x130] sm:$0xff] %vm284_vm0, %v258_v43  ;;  %324 = vst.msk [vmem:[%s964_s3 + $0x138] sm:$0xff] %vm284_vm0, %v259_v46  ;;  %v197_v54 = vadd.f32 %v386_v2, %v126_v47  ;;  %v198_v55 = vadd.f32 %v386_v2, %v127_v48  ;;  %v199_v56 = vadd.f32 %v386_v2, %v128_v49  ;;  %v260_v59 = vmax.f32 %v196_v50, 0.0  ;;  %v76_v42 = vld [vmem:[%s961_s0 + $0x1f0] sm:$0xff]  ;;  %v77_v47 = vld [vmem:[%s961_s0 + $0x1f8] sm:$0xff] }
  0x26   :  { %v132_v57 = vmul.f32 %v381_v1, %v61_v45  ;;  %v200_v60 = vadd.f32 %v386_v2, %v129_v51  ;;  %v201_v61 = vadd.f32 %v386_v2, %v130_v52  ;;  %v202_v62 = vadd.f32 %v386_v2, %v131_v53 }
  0x27   :  { %v261_v4 = vmax.f32 %v197_v54, 0.0  ;;  %v262_v5 = vmax.f32 %v198_v55, 0.0  ;;  %v263_v6 = vmax.f32 %v199_v56, 0.0  ;;  %325 = vst.msk [vmem:[%s964_s3 + $0x140] sm:$0xff] %vm284_vm0, %v260_v59  ;;  %v133_v14 = vmul.f32 %v381_v1, %v62_v58 }
  0x28   :  { %v203_v7 = vadd.f32 %v386_v2, %v132_v57  ;;  %v264_v11 = vmax.f32 %v200_v60, 0.0  ;;  %v265_v12 = vmax.f32 %v201_v61, 0.0  ;;  %v266_v13 = vmax.f32 %v202_v62, 0.0 }
  0x29   :  { %326 = vst.msk [vmem:[%s964_s3 + $0x148] sm:$0xff] %vm284_vm0, %v261_v4  ;;  %327 = vst.msk [vmem:[%s964_s3 + $0x150] sm:$0xff] %vm284_vm0, %v262_v5  ;;  %v134_v17 = vmul.f32 %v381_v1, %v63_v63  ;;  %v135_v18 = vmul.f32 %v381_v1, %v64_v0  ;;  %v136_v19 = vmul.f32 %v381_v1, %v65_v3 }
  0x2a   :  { %328 = vst.msk [vmem:[%s964_s3 + $0x158] sm:$0xff] %vm284_vm0, %v263_v6  ;;  %v267_v16 = vmax.f32 %v203_v7, 0.0  ;;  %329 = vst.msk [vmem:[%s964_s3 + $0x160] sm:$0xff] %vm284_vm0, %v264_v11  ;;  %v204_v20 = vadd.f32 %v386_v2, %v133_v14  ;;  %v137_v21 = vmul.f32 %v381_v1, %v66_v8  ;;  %v138_v22 = vmul.f32 %v381_v1, %v67_v9 }
  0x2b   :  { %330 = vst.msk [vmem:[%s964_s3 + $0x168] sm:$0xff] %vm284_vm0, %v265_v12  ;;  %331 = vst.msk [vmem:[%s964_s3 + $0x170] sm:$0xff] %vm284_vm0, %v266_v13  ;;  %v139_v23 = vmul.f32 %v381_v1, %v68_v10  ;;  %v205_v24 = vadd.f32 %v386_v2, %v134_v17  ;;  %v206_v25 = vadd.f32 %v386_v2, %v135_v18 }
  0x2c   :  { %332 = vst.msk [vmem:[%s964_s3 + $0x178] sm:$0xff] %vm284_vm0, %v267_v16  ;;  %v207_v26 = vadd.f32 %v386_v2, %v136_v19  ;;  %v140_v27 = vmul.f32 %v381_v1, %v69_v15  ;;  %v268_v29 = vmax.f32 %v204_v20, 0.0  ;;  %v208_v30 = vadd.f32 %v386_v2, %v137_v21 }
  0x2d   :  { %v209_v31 = vadd.f32 %v386_v2, %v138_v22  ;;  %v210_v32 = vadd.f32 %v386_v2, %v139_v23  ;;  %v269_v36 = vmax.f32 %v205_v24, 0.0  ;;  %v270_v37 = vmax.f32 %v206_v25, 0.0 }
  0x2e   :  { %v271_v38 = vmax.f32 %v207_v26, 0.0  ;;  %v211_v39 = vadd.f32 %v386_v2, %v140_v27  ;;  %333 = vst.msk [vmem:[%s964_s3 + $0x180] sm:$0xff] %vm284_vm0, %v268_v29  ;;  %v272_v43 = vmax.f32 %v208_v30, 0.0  ;;  %v141_v46 = vmul.f32 %v381_v1, %v70_v28 }
  0x2f   :  { %v273_v44 = vmax.f32 %v209_v31, 0.0  ;;  %v274_v45 = vmax.f32 %v210_v32, 0.0  ;;  %334 = vst.msk [vmem:[%s964_s3 + $0x188] sm:$0xff] %vm284_vm0, %v269_v36  ;;  %335 = vst.msk [vmem:[%s964_s3 + $0x190] sm:$0xff] %vm284_vm0, %v270_v37  ;;  %v142_v49 = vmul.f32 %v381_v1, %v71_v33  ;;  %v143_v50 = vmul.f32 %v381_v1, %v72_v34 }
  0x30   :  { %336 = vst.msk [vmem:[%s964_s3 + $0x198] sm:$0xff] %vm284_vm0, %v271_v38  ;;  %v275_v48 = vmax.f32 %v211_v39, 0.0  ;;  %v144_v51 = vmul.f32 %v381_v1, %v73_v35  ;;  %337 = vst.msk [vmem:[%s964_s3 + $0x1a0] sm:$0xff] %vm284_vm0, %v272_v43  ;;  %v212_v52 = vadd.f32 %v386_v2, %v141_v46  ;;  %v145_v53 = vmul.f32 %v381_v1, %v74_v40 }
  0x31   :  { %338 = vst.msk [vmem:[%s964_s3 + $0x1a8] sm:$0xff] %vm284_vm0, %v273_v44  ;;  %339 = vst.msk [vmem:[%s964_s3 + $0x1b0] sm:$0xff] %vm284_vm0, %v274_v45  ;;  %v146_v54 = vmul.f32 %v381_v1, %v75_v41  ;;  %v147_v55 = vmul.f32 %v381_v1, %v76_v42  ;;  %v213_v56 = vadd.f32 %v386_v2, %v142_v49 }
  0x32   :  { %340 = vst.msk [vmem:[%s964_s3 + $0x1b8] sm:$0xff] %vm284_vm0, %v275_v48  ;;  %v214_v57 = vadd.f32 %v386_v2, %v143_v50  ;;  %v215_v58 = vadd.f32 %v386_v2, %v144_v51  ;;  %v148_v59 = vmul.f32 %v381_v1, %v77_v47  ;;  %v276_v60 = vmax.f32 %v212_v52, 0.0 }
  0x33   :  { %v216_v61 = vadd.f32 %v386_v2, %v145_v53  ;;  %v217_v62 = vadd.f32 %v386_v2, %v146_v54  ;;  %v218_v63 = vadd.f32 %v386_v2, %v147_v55  ;;  %v277_v0 = vmax.f32 %v213_v56, 0.0 }
  0x34   :  { %v278_v3 = vmax.f32 %v214_v57, 0.0  ;;  %v279_v4 = vmax.f32 %v215_v58, 0.0  ;;  %v219_v5 = vadd.f32 %v386_v2, %v148_v59  ;;  %341 = vst.msk [vmem:[%s964_s3 + $0x1c0] sm:$0xff] %vm284_vm0, %v276_v60 }
  0x35   :  { %v280_v6 = vmax.f32 %v216_v61, 0.0  ;;  %v281_v7 = vmax.f32 %v217_v62, 0.0  ;;  %v282_v1 = vmax.f32 %v218_v63, 0.0  ;;  %342 = vst.msk [vmem:[%s964_s3 + $0x1c8] sm:$0xff] %vm284_vm0, %v277_v0 }
  0x36   :  { %343 = vst.msk [vmem:[%s964_s3 + $0x1d0] sm:$0xff] %vm284_vm0, %v278_v3  ;;  %344 = vst.msk [vmem:[%s964_s3 + $0x1d8] sm:$0xff] %vm284_vm0, %v279_v4  ;;  %v283_v2 = vmax.f32 %v219_v5, 0.0 }
  0x37   :  { %345 = vst.msk [vmem:[%s964_s3 + $0x1e0] sm:$0xff] %vm284_vm0, %v280_v6  ;;  %346 = vst.msk [vmem:[%s964_s3 + $0x1e8] sm:$0xff] %vm284_vm0, %v281_v7 }
  0x38   :  { %347 = vst.msk [vmem:[%s964_s3 + $0x1f0] sm:$0xff] %vm284_vm0, %v282_v1  ;;  %348 = vst.msk [vmem:[%s964_s3 + $0x1f8] sm:$0xff] %vm284_vm0, %v283_v2 }

// kernel: deconv_block_5x5.2
= control target key start
LH: loop header
LB: loop body
LE: loop exit
PB: predicated region body
PF: predicated region fallthrough
CT: control target
= control target key end

     0   :  { %vm272_vm0 = vcmask 1043456   ;;  %vm79_vm1 = vcmask 31744   ;;  %vm661_vm2 = vcmask 261120   ;;  %s2156_s1 = inlined_call_operand.vmem [shape: f32[4,32], index: 1, kind: input, shape index: {}]   ;;  %s2157_s0 = inlined_call_operand.vmem [shape: f32[512,4], index: 0, kind: input, shape index: {}]   ;;  %s2158_s2 = inlined_call_operand.vmem [shape: f32[512,32], index: 2, kind: output, shape index: {0}]   ;;  %s2159_s3 = inlined_call_operand.vmem [shape: f32[1,8,32], index: 3, kind: output, shape index: {1}]   ;;  %s2160_s4 = inlined_call_operand.vmem [shape: f32[1,8,32], index: 4, kind: output, shape index: {2}]  }
   0x1   :  { %v78_v0 = vld [vmem:[%s2156_s1] sm:$0xf]  ;;  %v15_v2 = vld [vmem:[%s2157_s0 + $0x8] sm:$0xff]  ;;  %v16_v3 = vld [vmem:[%s2157_s0 + $0x10] sm:$0xff] }
   0x2   :  { %v14_v1 = vld [vmem:[%s2157_s0] sm:$0xff]  ;;  %1188 = vmatprep.subr.msk.mxu0 %vm272_vm0, %v78_v0  ;;  %1286 = vmatprep.subr.msk.mxu1 %vm272_vm0, %v78_v0  ;;  %v17_v4 = vld [vmem:[%s2157_s0 + $0x18] sm:$0xff]  ;;  %v19_v6 = vld [vmem:[%s2157_s0 + $0x28] sm:$0xff] }
   0x3   :  { %1190 = vmatprep.mubr.msk.f32.mxu0 %vm79_vm1, %v14_v1  ;;  %1189 = vmatpush3.msk.msra.mxu0 %vm272_vm0, %v78_v0  ;;  %v18_v5 = vld [vmem:[%s2157_s0 + $0x20] sm:$0xff]  ;;  %v20_v7 = vld [vmem:[%s2157_s0 + $0x30] sm:$0xff]  ;;  %v47_v9 = vld [vmem:[%s2157_s0 + $0x108] sm:$0xff] }
   0x4   :  { %1191 = vmatmul.mubr.msk.f32.vlgmr.msra.gmra.mxu0 %vm79_vm1, %v15_v2  ;;  %1287 = vmatpush3.msk.msra.mxu1 %vm272_vm0, %v78_v0  ;;  %v46_v8 = vld [vmem:[%s2157_s0 + $0x100] sm:$0xff]  ;;  %v48_v10 = vld [vmem:[%s2157_s0 + $0x110] sm:$0xff]  ;;  %v21_v11 = vld [vmem:[%s2157_s0 + $0x38] sm:$0xff] }
   0x5   :  { %1193 = vmatprep.mubr.msk.f32.mxu0 %vm79_vm1, %v16_v3  ;;  %1238 = vmatprep.mubr.msk.f32.mxu1 %vm79_vm1, %v46_v8  ;;  %v22_v12 = vld [vmem:[%s2157_s0 + $0x40] sm:$0xff]  ;;  %v49_v13 = vld [vmem:[%s2157_s0 + $0x118] sm:$0xff]  ;;  %v23_v15 = vld [vmem:[%s2157_s0 + $0x48] sm:$0xff] }
   0x6   :  { %1239 = vmatmul.mubr.msk.f32.vlgmr.msra.gmra.mxu1 %vm79_vm1, %v47_v9  ;;  %v50_v14 = vld [vmem:[%s2157_s0 + $0x120] sm:$0xff]  ;;  %v24_v16 = vld [vmem:[%s2157_s0 + $0x50] sm:$0xff]  ;;  %v51_v17 = vld [vmem:[%s2157_s0 + $0x128] sm:$0xff] }
   0x7   :  { %1241 = vmatprep.mubr.msk.f32.mxu1 %vm79_vm1, %v48_v10  ;;  %v52_v18 = vld [vmem:[%s2157_s0 + $0x130] sm:$0xff]  ;;  %v25_v19 = vld [vmem:[%s2157_s0 + $0x58] sm:$0xff]  ;;  %v26_v20 = vld [vmem:[%s2157_s0 + $0x60] sm:$0xff] }
   0x8   :  { %1194 = vmatmul.mubr.msk.f32.gmra.mxu0 %vm79_vm1, %v17_v4  ;;  %v53_v21 = vld [vmem:[%s2157_s0 + $0x138] sm:$0xff]  ;;  %v54_v22 = vld [vmem:[%s2157_s0 + $0x140] sm:$0xff]  ;;  %v27_v23 = vld [vmem:[%s2157_s0 + $0x68] sm:$0xff] }
   0x9   :  { %1196 = vmatprep.mubr.msk.f32.mxu0 %vm79_vm1, %v18_v5  ;;  %v28_v24 = vld [vmem:[%s2157_s0 + $0x70] sm:$0xff]  ;;  %v55_v25 = vld [vmem:[%s2157_s0 + $0x148] sm:$0xff]  ;;  %v29_v27 = vld [vmem:[%s2157_s0 + $0x78] sm:$0xff] }
   0xa   :  { %1242 = vmatmul.mubr.msk.f32.gmra.mxu1 %vm79_vm1, %v49_v13  ;;  %v56_v26 = vld [vmem:[%s2157_s0 + $0x150] sm:$0xff]  ;;  %v30_v28 = vld [vmem:[%s2157_s0 + $0x80] sm:$0xff]  ;;  %v57_v29 = vld [vmem:[%s2157_s0 + $0x158] sm:$0xff] }
   0xb   :  { %1244 = vmatprep.mubr.msk.f32.mxu1 %vm79_vm1, %v50_v14  ;;  %v58_v30 = vld [vmem:[%s2157_s0 + $0x160] sm:$0xff]  ;;  %v31_v31 = vld [vmem:[%s2157_s0 + $0x88] sm:$0xff]  ;;  %v32_v32 = vld [vmem:[%s2157_s0 + $0x90] sm:$0xff] }
   0xc   :  { %1197 = vmatmul.mubr.msk.f32.gmra.mxu0 %vm79_vm1, %v19_v6  ;;  %v59_v33 = vld [vmem:[%s2157_s0 + $0x168] sm:$0xff]  ;;  %v60_v34 = vld [vmem:[%s2157_s0 + $0x170] sm:$0xff]  ;;  %v33_v35 = vld [vmem:[%s2157_s0 + $0x98] sm:$0xff] }
   0xd   :  { %1199 = vmatprep.mubr.msk.f32.mxu0 %vm79_vm1, %v20_v7  ;;  %v34_v36 = vld [vmem:[%s2157_s0 + $0xa0] sm:$0xff]  ;;  %v61_v37 = vld [vmem:[%s2157_s0 + $0x178] sm:$0xff]  ;;  %v35_v39 = vld [vmem:[%s2157_s0 + $0xa8] sm:$0xff] }
   0xe   :  { %1245 = vmatmul.mubr.msk.f32.gmra.mxu1 %vm79_vm1, %v51_v17  ;;  %v62_v38 = vld [vmem:[%s2157_s0 + $0x180] sm:$0xff]  ;;  %v36_v40 = vld [vmem:[%s2157_s0 + $0xb0] sm:$0xff]  ;;  %v63_v41 = vld [vmem:[%s2157_s0 + $0x188] sm:$0xff] }
   0xf   :  { %1247 = vmatprep.mubr.msk.f32.mxu1 %vm79_vm1, %v52_v18  ;;  %v64_v42 = vld [vmem:[%s2157_s0 + $0x190] sm:$0xff]  ;;  %v37_v43 = vld [vmem:[%s2157_s0 + $0xb8] sm:$0xff]  ;;  %v38_v44 = vld [vmem:[%s2157_s0 + $0xc0] sm:$0xff] }
  0x10   :  { %1200 = vmatmul.mubr.msk.f32.gmra.mxu0 %vm79_vm1, %v21_v11  ;;  %v65_v45 = vld [vmem:[%s2157_s0 + $0x198] sm:$0xff]  ;;  %v66_v46 = vld [vmem:[%s2157_s0 + $0x1a0] sm:$0xff]  ;;  %v39_v47 = vld [vmem:[%s2157_s0 + $0xc8] sm:$0xff] }
  0x11   :  { %1202 = vmatprep.mubr.msk.f32.mxu0 %vm79_vm1, %v22_v12  ;;  %v40_v48 = vld [vmem:[%s2157_s0 + $0xd0] sm:$0xff]  ;;  %v67_v49 = vld [vmem:[%s2157_s0 + $0x1a8] sm:$0xff]  ;;  %v41_v51 = vld [vmem:[%s2157_s0 + $0xd8] sm:$0xff] }
  0x12   :  { %1248 = vmatmul.mubr.msk.f32.gmra.mxu1 %vm79_vm1, %v53_v21  ;;  %v68_v50 = vld [vmem:[%s2157_s0 + $0x1b0] sm:$0xff]  ;;  %v42_v52 = vld [vmem:[%s2157_s0 + $0xe0] sm:$0xff]  ;;  %v69_v53 = vld [vmem:[%s2157_s0 + $0x1b8] sm:$0xff] }
  0x13   :  { %1250 = vmatprep.mubr.msk.f32.mxu1 %vm79_vm1, %v54_v22  ;;  %v70_v54 = vld [vmem:[%s2157_s0 + $0x1c0] sm:$0xff]  ;;  %v43_v55 = vld [vmem:[%s2157_s0 + $0xe8] sm:$0xff]  ;;  %v44_v56 = vld [vmem:[%s2157_s0 + $0xf0] sm:$0xff] }
  0x14   :  { %1203 = vmatmul.mubr.msk.f32.gmra.mxu0 %vm79_vm1, %v23_v15  ;;  %v71_v57 = vld [vmem:[%s2157_s0 + $0x1c8] sm:$0xff]  ;;  %v72_v58 = vld [vmem:[%s2157_s0 + $0x1d0] sm:$0xff]  ;;  %v45_v59 = vld [vmem:[%s2157_s0 + $0xf8] sm:$0xff] }
  0x15   :  { %1205 = vmatprep.mubr.msk.f32.mxu0 %vm79_vm1, %v24_v16  ;;  %v73_v60 = vld [vmem:[%s2157_s0 + $0x1d8] sm:$0xff]  ;;  %v74_v61 = vld [vmem:[%s2157_s0 + $0x1e0] sm:$0xff]  ;;  %v75_v62 = vld [vmem:[%s2157_s0 + $0x1e8] sm:$0xff] }
  0x16   :  { %1251 = vmatmul.mubr.msk.f32.gmra.mxu1 %vm79_vm1, %v55_v25  ;;  %v76_v63 = vld [vmem:[%s2157_s0 + $0x1f0] sm:$0xff]  ;;  %v77_v0 = vld [vmem:[%s2157_s0 + $0x1f8] sm:$0xff] }
  0x17   :  { %1253 = vmatprep.mubr.msk.f32.mxu1 %vm79_vm1, %v56_v26 }
  0x18   :  { %1206 = vmatmul.mubr.msk.f32.gmra.mxu0 %vm79_vm1, %v25_v19 }
  0x19   :  { %1208 = vmatprep.mubr.msk.f32.mxu0 %vm79_vm1, %v26_v20 }
  0x1a   :  { %1254 = vmatmul.mubr.msk.f32.gmra.mxu1 %vm79_vm1, %v57_v29 }
  0x1b   :  { %1256 = vmatprep.mubr.msk.f32.mxu1 %vm79_vm1, %v58_v30 }
  0x1c   :  { %1209 = vmatmul.mubr.msk.f32.gmra.mxu0 %vm79_vm1, %v27_v23 }
  0x1d   :  { %1211 = vmatprep.mubr.msk.f32.mxu0 %vm79_vm1, %v28_v24 }
  0x1e   :  { %1257 = vmatmul.mubr.msk.f32.gmra.mxu1 %vm79_vm1, %v59_v33 }
  0x1f   :  { %1259 = vmatprep.mubr.msk.f32.mxu1 %vm79_vm1, %v60_v34 }
  0x20   :  { %1212 = vmatmul.mubr.msk.f32.gmra.mxu0 %vm79_vm1, %v29_v27 }
  0x21   :  { %1214 = vmatprep.mubr.msk.f32.mxu0 %vm79_vm1, %v30_v28 }
  0x22   :  { %1260 = vmatmul.mubr.msk.f32.gmra.mxu1 %vm79_vm1, %v61_v37 }
  0x23   :  { %1262 = vmatprep.mubr.msk.f32.mxu1 %vm79_vm1, %v62_v38 }
  0x24   :  { %1215 = vmatmul.mubr.msk.f32.gmra.mxu0 %vm79_vm1, %v31_v31 }
  0x25   :  { %1217 = vmatprep.mubr.msk.f32.mxu0 %vm79_vm1, %v32_v32 }
  0x26   :  { %1263 = vmatmul.mubr.msk.f32.gmra.mxu1 %vm79_vm1, %v63_v41 }
  0x27   :  { %1265 = vmatprep.mubr.msk.f32.mxu1 %vm79_vm1, %v64_v42 }
  0x28   :  { %1218 = vmatmul.mubr.msk.f32.gmra.mxu0 %vm79_vm1, %v33_v35 }
  0x29   :  { %1220 = vmatprep.mubr.msk.f32.mxu0 %vm79_vm1, %v34_v36 }
  0x2a   :  { %1266 = vmatmul.mubr.msk.f32.gmra.mxu1 %vm79_vm1, %v65_v45 }
  0x2b   :  { %1268 = vmatprep.mubr.msk.f32.mxu1 %vm79_vm1, %v66_v46 }
  0x2c   :  { %1221 = vmatmul.mubr.msk.f32.gmra.mxu0 %vm79_vm1, %v35_v39 }
  0x2d   :  { %1223 = vmatprep.mubr.msk.f32.mxu0 %vm79_vm1, %v36_v40 }
  0x2e   :  { %1269 = vmatmul.mubr.msk.f32.gmra.mxu1 %vm79_vm1, %v67_v49 }
  0x2f   :  { %1271 = vmatprep.mubr.msk.f32.mxu1 %vm79_vm1, %v68_v50 }
  0x30   :  { %1224 = vmatmul.mubr.msk.f32.gmra.mxu0 %vm79_vm1, %v37_v43 }
  0x31   :  { %1226 = vmatprep.mubr.msk.f32.mxu0 %vm79_vm1, %v38_v44 }
  0x32   :  { %1272 = vmatmul.mubr.msk.f32.gmra.mxu1 %vm79_vm1, %v69_v53 }
  0x33   :  { %1274 = vmatprep.mubr.msk.f32.mxu1 %vm79_vm1, %v70_v54 }
  0x34   :  { %1227 = vmatmul.mubr.msk.f32.gmra.mxu0 %vm79_vm1, %v39_v47 }
  0x35   :  { %1229 = vmatprep.mubr.msk.f32.mxu0 %vm79_vm1, %v40_v48 }
  0x36   :  { %1275 = vmatmul.mubr.msk.f32.gmra.mxu1 %vm79_vm1, %v71_v57 }
  0x37   :  { %1277 = vmatprep.mubr.msk.f32.mxu1 %vm79_vm1, %v72_v58 }
  0x38   :  { %1230 = vmatmul.mubr.msk.f32.gmra.mxu0 %vm79_vm1, %v41_v51 }
  0x39   :  { %1232 = vmatprep.mubr.msk.f32.mxu0 %vm79_vm1, %v42_v52 }
  0x3a   :  { %1278 = vmatmul.mubr.msk.f32.gmra.mxu1 %vm79_vm1, %v73_v60 }
  0x3b   :  { %1280 = vmatprep.mubr.msk.f32.mxu1 %vm79_vm1, %v74_v61 }
  0x3c   :  { %1233 = vmatmul.mubr.msk.f32.gmra.mxu0 %vm79_vm1, %v43_v55 }
  0x3d   :  { %1235 = vmatprep.mubr.msk.f32.mxu0 %vm79_vm1, %v44_v56 }
  0x3e   :  { %1281 = vmatmul.mubr.msk.f32.gmra.mxu1 %vm79_vm1, %v75_v62 }
  0x3f   :  { %1283 = vmatprep.mubr.msk.f32.mxu1 %vm79_vm1, %v76_v63 }
  0x40   :  { %1236 = vmatmul.mubr.msk.f32.gmra.mxu0 %vm79_vm1, %v45_v59 }
  0x42   :  { %1284 = vmatmul.mubr.msk.f32.gmra.mxu1 %vm79_vm1, %v77_v0 }
  0xc4   :  { %v1192_v1 = vpop.f32.mrf.mxu0 }
  0xc5   :  { %663 = vst.msk [vmem:[%s2158_s2 + $0x8] sm:$0xff] %vm661_vm2, %v1192_v1  ;;  %v855_v3 = vmul.f32 %v1192_v1, %v1192_v1  ;;  %v727_v7 = vsel %vm661_vm2, %v1192_v1, 0.0 }
  0xc6   :  { %v342_v2 = vpop.f32.mrf.mxu0  ;;  %v1599_v23 = vpop.f32.mrf.mxu1 }
  0xc7   :  { %662 = vst.msk [vmem:[%s2158_s2] sm:$0xff] %vm661_vm2, %v342_v2  ;;  %v726_v4 = vsel %vm661_vm2, %v342_v2, 0.0  ;;  %v854_v5 = vmul.f32 %v342_v2, %v342_v2  ;;  %v919_v11 = vsel %vm661_vm2, %v855_v3, 0.0  ;;  %695 = vst.msk [vmem:[%s2158_s2 + $0x108] sm:$0xff] %vm661_vm2, %v1599_v23 }
  0xc8   :  { %v1195_v6 = vpop.f32.mrf.mxu0  ;;  %v728_v9 = vadd.f32 %v727_v7, %v726_v4  ;;  %v1612_v31 = vpop.f32.mrf.mxu1 }
  0xc9   :  { %v918_v8 = vsel %vm661_vm2, %v854_v5, 0.0  ;;  %665 = vst.msk [vmem:[%s2158_s2 + $0x18] sm:$0xff] %vm661_vm2, %v1195_v6  ;;  %v857_v12 = vmul.f32 %v1195_v6, %v1195_v6  ;;  %v731_v18 = vsel %vm661_vm2, %v1195_v6, 0.0  ;;  %694 = vst.msk [vmem:[%s2158_s2 + $0x100] sm:$0xff] %vm661_vm2, %v1612_v31 }
  0xca   :  { %v352_v10 = vpop.f32.mrf.mxu0  ;;  %v920_v15 = vadd.f32 %v919_v11, %v918_v8  ;;  %v1625_v37 = vpop.f32.mrf.mxu1 }
  0xcb   :  { %664 = vst.msk [vmem:[%s2158_s2 + $0x10] sm:$0xff] %vm661_vm2, %v352_v10  ;;  %v729_v13 = vsel %vm661_vm2, %v352_v10, 0.0  ;;  %v856_v14 = vmul.f32 %v352_v10, %v352_v10  ;;  %v923_v24 = vsel %vm661_vm2, %v857_v12, 0.0  ;;  %697 = vst.msk [vmem:[%s2158_s2 + $0x118] sm:$0xff] %vm661_vm2, %v1625_v37 }
  0xcc   :  { %v730_v16 = vadd.f32 %v729_v13, %v728_v9  ;;  %v1198_v17 = vpop.f32.mrf.mxu0  ;;  %v1638_v45 = vpop.f32.mrf.mxu1 }
  0xcd   :  { %v921_v19 = vsel %vm661_vm2, %v856_v14, 0.0  ;;  %667 = vst.msk [vmem:[%s2158_s2 + $0x28] sm:$0xff] %vm661_vm2, %v1198_v17  ;;  %v859_v25 = vmul.f32 %v1198_v17, %v1198_v17  ;;  %v735_v32 = vsel %vm661_vm2, %v1198_v17, 0.0  ;;  %696 = vst.msk [vmem:[%s2158_s2 + $0x110] sm:$0xff] %vm661_vm2, %v1638_v45 }
  0xce   :  { %v922_v20 = vadd.f32 %v921_v19, %v920_v15  ;;  %v362_v21 = vpop.f32.mrf.mxu0  ;;  %v732_v22 = vadd.f32 %v731_v18, %v730_v16  ;;  %v1651_v51 = vpop.f32.mrf.mxu1 }
  0xcf   :  { %666 = vst.msk [vmem:[%s2158_s2 + $0x20] sm:$0xff] %vm661_vm2, %v362_v21  ;;  %v733_v26 = vsel %vm661_vm2, %v362_v21, 0.0  ;;  %v858_v27 = vmul.f32 %v362_v21, %v362_v21  ;;  %v927_v38 = vsel %vm661_vm2, %v859_v25, 0.0  ;;  %699 = vst.msk [vmem:[%s2158_s2 + $0x128] sm:$0xff] %vm661_vm2, %v1651_v51 }
  0xd0   :  { %v734_v28 = vadd.f32 %v733_v26, %v732_v22  ;;  %v924_v29 = vadd.f32 %v923_v24, %v922_v20  ;;  %v1201_v30 = vpop.f32.mrf.mxu0  ;;  %v1664_v59 = vpop.f32.mrf.mxu1 }
  0xd1   :  { %v925_v33 = vsel %vm661_vm2, %v858_v27, 0.0  ;;  %669 = vst.msk [vmem:[%s2158_s2 + $0x38] sm:$0xff] %vm661_vm2, %v1201_v30  ;;  %v861_v39 = vmul.f32 %v1201_v30, %v1201_v30  ;;  %v739_v46 = vsel %vm661_vm2, %v1201_v30, 0.0  ;;  %698 = vst.msk [vmem:[%s2158_s2 + $0x120] sm:$0xff] %vm661_vm2, %v1664_v59 }
  0xd2   :  { %v926_v34 = vadd.f32 %v925_v33, %v924_v29  ;;  %v372_v35 = vpop.f32.mrf.mxu0  ;;  %v736_v36 = vadd.f32 %v735_v32, %v734_v28  ;;  %v1677_v1 = vpop.f32.mrf.mxu1 }
  0xd3   :  { %668 = vst.msk [vmem:[%s2158_s2 + $0x30] sm:$0xff] %vm661_vm2, %v372_v35  ;;  %v737_v40 = vsel %vm661_vm2, %v372_v35, 0.0  ;;  %v860_v41 = vmul.f32 %v372_v35, %v372_v35  ;;  %v931_v52 = vsel %vm661_vm2, %v861_v39, 0.0  ;;  %701 = vst.msk [vmem:[%s2158_s2 + $0x138] sm:$0xff] %vm661_vm2, %v1677_v1 }
  0xd4   :  { %v738_v42 = vadd.f32 %v737_v40, %v736_v36  ;;  %v928_v43 = vadd.f32 %v927_v38, %v926_v34  ;;  %v1204_v44 = vpop.f32.mrf.mxu0  ;;  %v1690_v9 = vpop.f32.mrf.mxu1 }
  0xd5   :  { %v929_v47 = vsel %vm661_vm2, %v860_v41, 0.0  ;;  %671 = vst.msk [vmem:[%s2158_s2 + $0x48] sm:$0xff] %vm661_vm2, %v1204_v44  ;;  %v863_v53 = vmul.f32 %v1204_v44, %v1204_v44  ;;  %v743_v60 = vsel %vm661_vm2, %v1204_v44, 0.0  ;;  %700 = vst.msk [vmem:[%s2158_s2 + $0x130] sm:$0xff] %vm661_vm2, %v1690_v9 }
  0xd6   :  { %v930_v48 = vadd.f32 %v929_v47, %v928_v43  ;;  %v382_v49 = vpop.f32.mrf.mxu0  ;;  %v740_v50 = vadd.f32 %v739_v46, %v738_v42  ;;  %v1703_v15 = vpop.f32.mrf.mxu1 }
  0xd7   :  { %670 = vst.msk [vmem:[%s2158_s2 + $0x40] sm:$0xff] %vm661_vm2, %v382_v49  ;;  %v741_v54 = vsel %vm661_vm2, %v382_v49, 0.0  ;;  %v862_v55 = vmul.f32 %v382_v49, %v382_v49  ;;  %v935_v2 = vsel %vm661_vm2, %v863_v53, 0.0  ;;  %703 = vst.msk [vmem:[%s2158_s2 + $0x148] sm:$0xff] %vm661_vm2, %v1703_v15 }
  0xd8   :  { %v742_v56 = vadd.f32 %v741_v54, %v740_v50  ;;  %v932_v57 = vadd.f32 %v931_v52, %v930_v48  ;;  %v1207_v58 = vpop.f32.mrf.mxu0  ;;  %v1716_v24 = vpop.f32.mrf.mxu1 }
  0xd9   :  { %v933_v61 = vsel %vm661_vm2, %v862_v55, 0.0  ;;  %673 = vst.msk [vmem:[%s2158_s2 + $0x58] sm:$0xff] %vm661_vm2, %v1207_v58  ;;  %v865_v3 = vmul.f32 %v1207_v58, %v1207_v58  ;;  %v747_v10 = vsel %vm661_vm2, %v1207_v58, 0.0  ;;  %702 = vst.msk [vmem:[%s2158_s2 + $0x140] sm:$0xff] %vm661_vm2, %v1716_v24 }
  0xda   :  { %v934_v62 = vadd.f32 %v933_v61, %v932_v57  ;;  %v392_v63 = vpop.f32.mrf.mxu0  ;;  %v744_v0 = vadd.f32 %v743_v60, %v742_v56  ;;  %v1729_v30 = vpop.f32.mrf.mxu1 }
  0xdb   :  { %672 = vst.msk [vmem:[%s2158_s2 + $0x50] sm:$0xff] %vm661_vm2, %v392_v63  ;;  %v745_v4 = vsel %vm661_vm2, %v392_v63, 0.0  ;;  %v864_v5 = vmul.f32 %v392_v63, %v392_v63  ;;  %v939_v16 = vsel %vm661_vm2, %v865_v3, 0.0  ;;  %705 = vst.msk [vmem:[%s2158_s2 + $0x158] sm:$0xff] %vm661_vm2, %v1729_v30 }
  0xdc   :  { %v746_v6 = vadd.f32 %v745_v4, %v744_v0  ;;  %v936_v7 = vadd.f32 %v935_v2, %v934_v62  ;;  %v1210_v8 = vpop.f32.mrf.mxu0  ;;  %v1742_v40 = vpop.f32.mrf.mxu1 }
  0xdd   :  { %v937_v11 = vsel %vm661_vm2, %v864_v5, 0.0  ;;  %675 = vst.msk [vmem:[%s2158_s2 + $0x68] sm:$0xff] %vm661_vm2, %v1210_v8  ;;  %v867_v17 = vmul.f32 %v1210_v8, %v1210_v8  ;;  %v751_v25 = vsel %vm661_vm2, %v1210_v8, 0.0  ;;  %704 = vst.msk [vmem:[%s2158_s2 + $0x150] sm:$0xff] %vm661_vm2, %v1742_v40 }
  0xde   :  { %v938_v12 = vadd.f32 %v937_v11, %v936_v7  ;;  %v402_v13 = vpop.f32.mrf.mxu0  ;;  %v748_v14 = vadd.f32 %v747_v10, %v746_v6  ;;  %v1755_v47 = vpop.f32.mrf.mxu1 }
  0xdf   :  { %674 = vst.msk [vmem:[%s2158_s2 + $0x60] sm:$0xff] %vm661_vm2, %v402_v13  ;;  %v749_v18 = vsel %vm661_vm2, %v402_v13, 0.0  ;;  %v866_v19 = vmul.f32 %v402_v13, %v402_v13  ;;  %v943_v32 = vsel %vm661_vm2, %v867_v17, 0.0  ;;  %707 = vst.msk [vmem:[%s2158_s2 + $0x168] sm:$0xff] %vm661_vm2, %v1755_v47 }
  0xe0   :  { %v750_v20 = vadd.f32 %v749_v18, %v748_v14  ;;  %v940_v21 = vadd.f32 %v939_v16, %v938_v12  ;;  %v1213_v22 = vpop.f32.mrf.mxu0  ;;  %v1768_v56 = vpop.f32.mrf.mxu1 }
  0xe1   :  { %v941_v26 = vsel %vm661_vm2, %v866_v19, 0.0  ;;  %677 = vst.msk [vmem:[%s2158_s2 + $0x78] sm:$0xff] %vm661_vm2, %v1213_v22  ;;  %v869_v33 = vmul.f32 %v1213_v22, %v1213_v22  ;;  %v755_v41 = vsel %vm661_vm2, %v1213_v22, 0.0  ;;  %706 = vst.msk [vmem:[%s2158_s2 + $0x160] sm:$0xff] %vm661_vm2, %v1768_v56 }
  0xe2   :  { %v942_v27 = vadd.f32 %v941_v26, %v940_v21  ;;  %v412_v28 = vpop.f32.mrf.mxu0  ;;  %v752_v29 = vadd.f32 %v751_v25, %v750_v20  ;;  %v1781_v63 = vpop.f32.mrf.mxu1 }
  0xe3   :  { %676 = vst.msk [vmem:[%s2158_s2 + $0x70] sm:$0xff] %vm661_vm2, %v412_v28  ;;  %v753_v34 = vsel %vm661_vm2, %v412_v28, 0.0  ;;  %v868_v35 = vmul.f32 %v412_v28, %v412_v28  ;;  %v947_v48 = vsel %vm661_vm2, %v869_v33, 0.0  ;;  %709 = vst.msk [vmem:[%s2158_s2 + $0x178] sm:$0xff] %vm661_vm2, %v1781_v63 }
  0xe4   :  { %v754_v36 = vadd.f32 %v753_v34, %v752_v29  ;;  %v944_v38 = vadd.f32 %v943_v32, %v942_v27  ;;  %v1216_v39 = vpop.f32.mrf.mxu0  ;;  %v1794_v8 = vpop.f32.mrf.mxu1 }
  0xe5   :  { %v945_v42 = vsel %vm661_vm2, %v868_v35, 0.0  ;;  %679 = vst.msk [vmem:[%s2158_s2 + $0x88] sm:$0xff] %vm661_vm2, %v1216_v39  ;;  %v871_v49 = vmul.f32 %v1216_v39, %v1216_v39  ;;  %v759_v57 = vsel %vm661_vm2, %v1216_v39, 0.0  ;;  %708 = vst.msk [vmem:[%s2158_s2 + $0x170] sm:$0xff] %vm661_vm2, %v1794_v8 }
  0xe6   :  { %v946_v43 = vadd.f32 %v945_v42, %v944_v38  ;;  %v422_v44 = vpop.f32.mrf.mxu0  ;;  %v756_v46 = vadd.f32 %v755_v41, %v754_v36  ;;  %v1807_v16 = vpop.f32.mrf.mxu1 }
  0xe7   :  { %678 = vst.msk [vmem:[%s2158_s2 + $0x80] sm:$0xff] %vm661_vm2, %v422_v44  ;;  %v757_v50 = vsel %vm661_vm2, %v422_v44, 0.0  ;;  %v870_v52 = vmul.f32 %v422_v44, %v422_v44  ;;  %v951_v0 = vsel %vm661_vm2, %v871_v49, 0.0  ;;  %711 = vst.msk [vmem:[%s2158_s2 + $0x188] sm:$0xff] %vm661_vm2, %v1807_v16 }
  0xe8   :  { %v758_v53 = vadd.f32 %v757_v50, %v756_v46  ;;  %v948_v54 = vadd.f32 %v947_v48, %v946_v43  ;;  %v1219_v55 = vpop.f32.mrf.mxu0  ;;  %v1820_v26 = vpop.f32.mrf.mxu1 }
  0xe9   :  { %v949_v58 = vsel %vm661_vm2, %v870_v52, 0.0  ;;  %681 = vst.msk [vmem:[%s2158_s2 + $0x98] sm:$0xff] %vm661_vm2, %v1219_v55  ;;  %v873_v2 = vmul.f32 %v1219_v55, %v1219_v55  ;;  %v763_v10 = vsel %vm661_vm2, %v1219_v55, 0.0  ;;  %710 = vst.msk [vmem:[%s2158_s2 + $0x180] sm:$0xff] %vm661_vm2, %v1820_v26 }
  0xea   :  { %v950_v60 = vadd.f32 %v949_v58, %v948_v54  ;;  %v432_v61 = vpop.f32.mrf.mxu0  ;;  %v760_v62 = vadd.f32 %v759_v57, %v758_v53  ;;  %v1833_v34 = vpop.f32.mrf.mxu1 }
  0xeb   :  { %680 = vst.msk [vmem:[%s2158_s2 + $0x90] sm:$0xff] %vm661_vm2, %v432_v61  ;;  %v761_v3 = vsel %vm661_vm2, %v432_v61, 0.0  ;;  %v872_v4 = vmul.f32 %v432_v61, %v432_v61  ;;  %v955_v17 = vsel %vm661_vm2, %v873_v2, 0.0  ;;  %713 = vst.msk [vmem:[%s2158_s2 + $0x198] sm:$0xff] %vm661_vm2, %v1833_v34 }
  0xec   :  { %v762_v5 = vadd.f32 %v761_v3, %v760_v62  ;;  %v952_v6 = vadd.f32 %v951_v0, %v950_v60  ;;  %v1222_v7 = vpop.f32.mrf.mxu0  ;;  %v1846_v44 = vpop.f32.mrf.mxu1 }
  0xed   :  { %v953_v11 = vsel %vm661_vm2, %v872_v4, 0.0  ;;  %683 = vst.msk [vmem:[%s2158_s2 + $0xa8] sm:$0xff] %vm661_vm2, %v1222_v7  ;;  %v875_v18 = vmul.f32 %v1222_v7, %v1222_v7  ;;  %v767_v27 = vsel %vm661_vm2, %v1222_v7, 0.0  ;;  %712 = vst.msk [vmem:[%s2158_s2 + $0x190] sm:$0xff] %vm661_vm2, %v1846_v44 }
  0xee   :  { %v954_v12 = vadd.f32 %v953_v11, %v952_v6  ;;  %v442_v13 = vpop.f32.mrf.mxu0  ;;  %v764_v14 = vadd.f32 %v763_v10, %v762_v5  ;;  %v1859_v53 = vpop.f32.mrf.mxu1 }
  0xef   :  { %682 = vst.msk [vmem:[%s2158_s2 + $0xa0] sm:$0xff] %vm661_vm2, %v442_v13  ;;  %v765_v19 = vsel %vm661_vm2, %v442_v13, 0.0  ;;  %v874_v20 = vmul.f32 %v442_v13, %v442_v13  ;;  %v959_v35 = vsel %vm661_vm2, %v875_v18, 0.0  ;;  %715 = vst.msk [vmem:[%s2158_s2 + $0x1a8] sm:$0xff] %vm661_vm2, %v1859_v53 }
  0xf0   :  { %v766_v21 = vadd.f32 %v765_v19, %v764_v14  ;;  %v956_v22 = vadd.f32 %v955_v17, %v954_v12  ;;  %v1225_v25 = vpop.f32.mrf.mxu0  ;;  %v1872_v0 = vpop.f32.mrf.mxu1 }
  0xf1   :  { %v957_v28 = vsel %vm661_vm2, %v874_v20, 0.0  ;;  %685 = vst.msk [vmem:[%s2158_s2 + $0xb8] sm:$0xff] %vm661_vm2, %v1225_v25  ;;  %v877_v36 = vmul.f32 %v1225_v25, %v1225_v25  ;;  %v771_v46 = vsel %vm661_vm2, %v1225_v25, 0.0  ;;  %714 = vst.msk [vmem:[%s2158_s2 + $0x1a0] sm:$0xff] %vm661_vm2, %v1872_v0 }
  0xf2   :  { %v958_v29 = vadd.f32 %v957_v28, %v956_v22  ;;  %v452_v32 = vpop.f32.mrf.mxu0  ;;  %v768_v33 = vadd.f32 %v767_v27, %v766_v21  ;;  %v1885_v7 = vpop.f32.mrf.mxu1 }
  0xf3   :  { %684 = vst.msk [vmem:[%s2158_s2 + $0xb0] sm:$0xff] %vm661_vm2, %v452_v32  ;;  %v769_v38 = vsel %vm661_vm2, %v452_v32, 0.0  ;;  %v876_v39 = vmul.f32 %v452_v32, %v452_v32  ;;  %v963_v54 = vsel %vm661_vm2, %v877_v36, 0.0  ;;  %717 = vst.msk [vmem:[%s2158_s2 + $0x1b8] sm:$0xff] %vm661_vm2, %v1885_v7 }
  0xf4   :  { %v770_v41 = vadd.f32 %v769_v38, %v768_v33  ;;  %v960_v42 = vadd.f32 %v959_v35, %v958_v29  ;;  %v1228_v43 = vpop.f32.mrf.mxu0  ;;  %v1898_v19 = vpop.f32.mrf.mxu1 }
  0xf5   :  { %v961_v48 = vsel %vm661_vm2, %v876_v39, 0.0  ;;  %687 = vst.msk [vmem:[%s2158_s2 + $0xc8] sm:$0xff] %vm661_vm2, %v1228_v43  ;;  %v879_v55 = vmul.f32 %v1228_v43, %v1228_v43  ;;  %v775_v2 = vsel %vm661_vm2, %v1228_v43, 0.0  ;;  %716 = vst.msk [vmem:[%s2158_s2 + $0x1b0] sm:$0xff] %vm661_vm2, %v1898_v19 }
  0xf6   :  { %v962_v49 = vadd.f32 %v961_v48, %v960_v42  ;;  %v462_v50 = vpop.f32.mrf.mxu0  ;;  %v772_v52 = vadd.f32 %v771_v46, %v770_v41  ;;  %v1911_v28 = vpop.f32.mrf.mxu1 }
  0xf7   :  { %686 = vst.msk [vmem:[%s2158_s2 + $0xc0] sm:$0xff] %vm661_vm2, %v462_v50  ;;  %v773_v57 = vsel %vm661_vm2, %v462_v50, 0.0  ;;  %v878_v58 = vmul.f32 %v462_v50, %v462_v50  ;;  %v967_v10 = vsel %vm661_vm2, %v879_v55, 0.0  ;;  %719 = vst.msk [vmem:[%s2158_s2 + $0x1c8] sm:$0xff] %vm661_vm2, %v1911_v28 }
  0xf8   :  { %v774_v60 = vadd.f32 %v773_v57, %v772_v52  ;;  %v964_v61 = vadd.f32 %v963_v54, %v962_v49  ;;  %v1231_v62 = vpop.f32.mrf.mxu0  ;;  %v1924_v41 = vpop.f32.mrf.mxu1 }
  0xf9   :  { %v965_v3 = vsel %vm661_vm2, %v878_v58, 0.0  ;;  %689 = vst.msk [vmem:[%s2158_s2 + $0xd8] sm:$0xff] %vm661_vm2, %v1231_v62  ;;  %v881_v11 = vmul.f32 %v1231_v62, %v1231_v62  ;;  %v779_v20 = vsel %vm661_vm2, %v1231_v62, 0.0  ;;  %718 = vst.msk [vmem:[%s2158_s2 + $0x1c0] sm:$0xff] %vm661_vm2, %v1924_v41 }
  0xfa   :  { %v966_v4 = vadd.f32 %v965_v3, %v964_v61  ;;  %v472_v5 = vpop.f32.mrf.mxu0  ;;  %v776_v6 = vadd.f32 %v775_v2, %v774_v60  ;;  %v1937_v50 = vpop.f32.mrf.mxu1  ;;  %v886_v3 = vmul.f32 %v1612_v31, %v1612_v31 }
  0xfb   :  { %688 = vst.msk [vmem:[%s2158_s2 + $0xd0] sm:$0xff] %vm661_vm2, %v472_v5  ;;  %v777_v12 = vsel %vm661_vm2, %v472_v5, 0.0  ;;  %v880_v13 = vmul.f32 %v472_v5, %v472_v5  ;;  %v971_v29 = vsel %vm661_vm2, %v881_v11, 0.0  ;;  %721 = vst.msk [vmem:[%s2158_s2 + $0x1d8] sm:$0xff] %vm661_vm2, %v1937_v50  ;;  %v887_v11 = vmul.f32 %v1599_v23, %v1599_v23 }
  0xfc   :  { %v778_v14 = vadd.f32 %v777_v12, %v776_v6  ;;  %v968_v17 = vadd.f32 %v967_v10, %v966_v4  ;;  %v1234_v18 = vpop.f32.mrf.mxu0  ;;  %v1950_v61 = vpop.f32.mrf.mxu1  ;;  %v789_v12 = vsel %vm661_vm2, %v1612_v31, 0.0 }
  0xfd   :  { %v969_v21 = vsel %vm661_vm2, %v880_v13, 0.0  ;;  %691 = vst.msk [vmem:[%s2158_s2 + $0xe8] sm:$0xff] %vm661_vm2, %v1234_v18  ;;  %v883_v32 = vmul.f32 %v1234_v18, %v1234_v18  ;;  %v783_v42 = vsel %vm661_vm2, %v1234_v18, 0.0  ;;  %720 = vst.msk [vmem:[%s2158_s2 + $0x1d0] sm:$0xff] %vm661_vm2, %v1950_v61  ;;  %v791_v18 = vsel %vm661_vm2, %v1599_v23, 0.0 }
  0xfe   :  { %v970_v22 = vadd.f32 %v969_v21, %v968_v17  ;;  %v482_v25 = vpop.f32.mrf.mxu0  ;;  %v780_v27 = vadd.f32 %v779_v20, %v778_v14  ;;  %v1961_v6 = vpop.f32.mrf.mxu1  ;;  %v981_v20 = vsel %vm661_vm2, %v886_v3, 0.0  ;;  %v888_v21 = vmul.f32 %v1638_v45, %v1638_v45 }
  0xff   :  { %690 = vst.msk [vmem:[%s2158_s2 + $0xe0] sm:$0xff] %vm661_vm2, %v482_v25  ;;  %v781_v33 = vsel %vm661_vm2, %v482_v25, 0.0  ;;  %v882_v35 = vmul.f32 %v482_v25, %v482_v25  ;;  %v975_v52 = vsel %vm661_vm2, %v883_v32, 0.0  ;;  %723 = vst.msk [vmem:[%s2158_s2 + $0x1e8] sm:$0xff] %vm661_vm2, %v1961_v6  ;;  %v889_v23 = vmul.f32 %v1625_v37, %v1625_v37 }
 0x100   :  { %v782_v36 = vadd.f32 %v781_v33, %v780_v27  ;;  %v972_v38 = vadd.f32 %v971_v29, %v970_v22  ;;  %v1237_v39 = vpop.f32.mrf.mxu0  ;;  %v1973_v17 = vpop.f32.mrf.mxu1  ;;  %v983_v27 = vsel %vm661_vm2, %v887_v11, 0.0  ;;  %v793_v29 = vsel %vm661_vm2, %v1638_v45, 0.0 }
 0x101   :  { %v973_v43 = vsel %vm661_vm2, %v882_v35, 0.0  ;;  %693 = vst.msk [vmem:[%s2158_s2 + $0xf8] sm:$0xff] %vm661_vm2, %v1237_v39  ;;  %v885_v54 = vmul.f32 %v1237_v39, %v1237_v39  ;;  %v787_v62 = vsel %vm661_vm2, %v1237_v39, 0.0  ;;  %722 = vst.msk [vmem:[%s2158_s2 + $0x1e0] sm:$0xff] %vm661_vm2, %v1973_v17  ;;  %v890_v39 = vmul.f32 %v1664_v59, %v1664_v59 }
 0x102   :  { %v974_v46 = vadd.f32 %v973_v43, %v972_v38  ;;  %v492_v48 = vpop.f32.mrf.mxu0  ;;  %v784_v49 = vadd.f32 %v783_v42, %v782_v36  ;;  %v1985_v25 = vpop.f32.mrf.mxu1  ;;  %v795_v36 = vsel %vm661_vm2, %v1625_v37, 0.0  ;;  %v985_v38 = vsel %vm661_vm2, %v888_v21, 0.0 }
 0x103   :  { %692 = vst.msk [vmem:[%s2158_s2 + $0xf0] sm:$0xff] %vm661_vm2, %v492_v48  ;;  %v785_v55 = vsel %vm661_vm2, %v492_v48, 0.0  ;;  %v884_v57 = vmul.f32 %v492_v48, %v492_v48  ;;  %v979_v10 = vsel %vm661_vm2, %v885_v54, 0.0  ;;  %725 = vst.msk [vmem:[%s2158_s2 + $0x1f8] sm:$0xff] %vm661_vm2, %v1985_v25  ;;  %v987_v43 = vsel %vm661_vm2, %v889_v23, 0.0 }
 0x104   :  { %v786_v58 = vadd.f32 %v785_v55, %v784_v49  ;;  %v976_v60 = vadd.f32 %v975_v52, %v974_v46  ;;  %v1997_v35 = vpop.f32.mrf.mxu1  ;;  %v891_v46 = vmul.f32 %v1651_v51, %v1651_v51  ;;  %v797_v37 = vsel %vm661_vm2, %v1664_v59, 0.0 }
 0x105   :  { %v977_v2 = vsel %vm661_vm2, %v884_v57, 0.0  ;;  %724 = vst.msk [vmem:[%s2158_s2 + $0x1f0] sm:$0xff] %vm661_vm2, %v1997_v35  ;;  %v799_v52 = vsel %vm661_vm2, %v1651_v51, 0.0  ;;  %v989_v54 = vsel %vm661_vm2, %v890_v39, 0.0  ;;  %v892_v55 = vmul.f32 %v1690_v9, %v1690_v9 }
 0x106   :  { %v788_v4 = vadd.f32 %v787_v62, %v786_v58  ;;  %v978_v5 = vadd.f32 %v977_v2, %v976_v60  ;;  %v991_v60 = vsel %vm661_vm2, %v891_v46, 0.0  ;;  %v893_v62 = vmul.f32 %v1677_v1, %v1677_v1 }
 0x107   :  { %v801_v59 = vsel %vm661_vm2, %v1690_v9, 0.0  ;;  %v803_v51 = vsel %vm661_vm2, %v1677_v1, 0.0  ;;  %v805_v9 = vsel %vm661_vm2, %v1716_v24, 0.0  ;;  %v807_v1 = vsel %vm661_vm2, %v1703_v15, 0.0 }
 0x108   :  { %v980_v13 = vadd.f32 %v979_v10, %v978_v5  ;;  %v790_v14 = vadd.f32 %v789_v12, %v788_v4  ;;  %v993_v4 = vsel %vm661_vm2, %v892_v55, 0.0  ;;  %v894_v5 = vmul.f32 %v1716_v24, %v1716_v24 }
 0x109   :  { %v995_v12 = vsel %vm661_vm2, %v893_v62, 0.0  ;;  %v896_v21 = vmul.f32 %v1742_v40, %v1742_v40  ;;  %v897_v23 = vmul.f32 %v1729_v30, %v1729_v30  ;;  %v809_v24 = vsel %vm661_vm2, %v1742_v40, 0.0 }
 0x10a   :  { %v982_v31 = vadd.f32 %v981_v20, %v980_v13  ;;  %v792_v22 = vadd.f32 %v791_v18, %v790_v14  ;;  %v895_v13 = vmul.f32 %v1703_v15, %v1703_v15  ;;  %v997_v20 = vsel %vm661_vm2, %v894_v5, 0.0 }
 0x10b   :  { %v811_v15 = vsel %vm661_vm2, %v1729_v30, 0.0  ;;  %v813_v40 = vsel %vm661_vm2, %v1768_v56, 0.0  ;;  %v815_v30 = vsel %vm661_vm2, %v1755_v47, 0.0  ;;  %v901_v55 = vmul.f32 %v1781_v63, %v1781_v63 }
 0x10c   :  { %v794_v32 = vadd.f32 %v793_v29, %v792_v22  ;;  %v984_v33 = vadd.f32 %v983_v27, %v982_v31  ;;  %v999_v27 = vsel %vm661_vm2, %v895_v13, 0.0  ;;  %v902_v62 = vmul.f32 %v1820_v26, %v1820_v26 }
 0x10e   :  { %v986_v45 = vadd.f32 %v985_v38, %v984_v33  ;;  %v796_v42 = vadd.f32 %v795_v36, %v794_v32  ;;  %v1001_v33 = vsel %vm661_vm2, %v896_v21, 0.0  ;;  %v898_v36 = vmul.f32 %v1768_v56, %v1768_v56 }
 0x10f   :  { %v817_v56 = vsel %vm661_vm2, %v1794_v8, 0.0  ;;  %v906_v21 = vmul.f32 %v1872_v0, %v1872_v0 }
 0x110   :  { %v798_v48 = vadd.f32 %v797_v37, %v796_v42  ;;  %v988_v49 = vadd.f32 %v987_v43, %v986_v45  ;;  %v1003_v45 = vsel %vm661_vm2, %v897_v23, 0.0  ;;  %v899_v42 = vmul.f32 %v1755_v47, %v1755_v47 }
 0x111   :  { %v1005_v37 = vsel %vm661_vm2, %v898_v36, 0.0  ;;  %v819_v47 = vsel %vm661_vm2, %v1781_v63, 0.0  ;;  %v823_v63 = vsel %vm661_vm2, %v1807_v16, 0.0  ;;  %v907_v23 = vmul.f32 %v1859_v53, %v1859_v53 }
 0x112   :  { %v990_v57 = vadd.f32 %v989_v54, %v988_v49  ;;  %v800_v58 = vadd.f32 %v799_v52, %v798_v48  ;;  %v900_v48 = vmul.f32 %v1794_v8, %v1794_v8  ;;  %v1007_v54 = vsel %vm661_vm2, %v899_v42, 0.0 }
 0x113   :  { %v821_v8 = vsel %vm661_vm2, %v1820_v26, 0.0  ;;  %v825_v26 = vsel %vm661_vm2, %v1846_v44, 0.0 }
 0x114   :  { %v802_v2 = vadd.f32 %v801_v59, %v800_v58  ;;  %v992_v3 = vadd.f32 %v991_v60, %v990_v57  ;;  %v1009_v60 = vsel %vm661_vm2, %v900_v48, 0.0  ;;  %v911_v48 = vmul.f32 %v1911_v28, %v1911_v28 }
 0x116   :  { %v994_v10 = vadd.f32 %v993_v4, %v992_v3  ;;  %v804_v11 = vadd.f32 %v803_v51, %v802_v2  ;;  %v1011_v3 = vsel %vm661_vm2, %v901_v55, 0.0  ;;  %v903_v51 = vmul.f32 %v1807_v16, %v1807_v16 }
 0x117   :  { %v827_v16 = vsel %vm661_vm2, %v1833_v34, 0.0  ;;  %v912_v55 = vmul.f32 %v1950_v61, %v1950_v61 }
 0x118   :  { %v806_v14 = vadd.f32 %v805_v9, %v804_v11  ;;  %v996_v18 = vadd.f32 %v995_v12, %v994_v10  ;;  %v1013_v10 = vsel %vm661_vm2, %v902_v62, 0.0  ;;  %v904_v11 = vmul.f32 %v1846_v44, %v1846_v44 }
 0x119   :  { %v1015_v9 = vsel %vm661_vm2, %v903_v51, 0.0  ;;  %v829_v44 = vsel %vm661_vm2, %v1872_v0, 0.0  ;;  %v833_v0 = vsel %vm661_vm2, %v1898_v19, 0.0 }
 0x11a   :  { %v998_v31 = vadd.f32 %v997_v20, %v996_v18  ;;  %v808_v22 = vadd.f32 %v807_v1, %v806_v14  ;;  %v905_v14 = vmul.f32 %v1833_v34, %v1833_v34  ;;  %v1017_v20 = vsel %vm661_vm2, %v904_v11, 0.0 }
 0x11b   :  { %v831_v34 = vsel %vm661_vm2, %v1859_v53, 0.0  ;;  %v835_v53 = vsel %vm661_vm2, %v1885_v7, 0.0  ;;  %v916_v11 = vmul.f32 %v1997_v35, %v1997_v35 }
 0x11c   :  { %v810_v29 = vadd.f32 %v809_v24, %v808_v22  ;;  %v1000_v32 = vadd.f32 %v999_v27, %v998_v31  ;;  %v1019_v27 = vsel %vm661_vm2, %v905_v14, 0.0  ;;  %v917_v14 = vmul.f32 %v1985_v25, %v1985_v25 }
 0x11e   :  { %v1002_v38 = vadd.f32 %v1001_v33, %v1000_v32  ;;  %v812_v39 = vadd.f32 %v811_v15, %v810_v29  ;;  %v1021_v32 = vsel %vm661_vm2, %v906_v21, 0.0  ;;  %v908_v15 = vmul.f32 %v1898_v19, %v1898_v19 }
 0x11f   :  { %v837_v19 = vsel %vm661_vm2, %v1924_v41, 0.0  ;;  %v1043_v21 = vsel %vm661_vm2, %v917_v14, 0.0 }
 0x120   :  { %v814_v43 = vadd.f32 %v813_v40, %v812_v39  ;;  %v1004_v46 = vadd.f32 %v1003_v45, %v1002_v38  ;;  %v1023_v38 = vsel %vm661_vm2, %v907_v23, 0.0  ;;  %v909_v39 = vmul.f32 %v1885_v7, %v1885_v7 }
 0x121   :  { %v1025_v40 = vsel %vm661_vm2, %v908_v15, 0.0  ;;  %v839_v7 = vsel %vm661_vm2, %v1911_v28, 0.0  ;;  %v843_v28 = vsel %vm661_vm2, %v1937_v50, 0.0 }
 0x122   :  { %v1006_v49 = vadd.f32 %v1005_v37, %v1004_v46  ;;  %v816_v52 = vadd.f32 %v815_v30, %v814_v43  ;;  %v910_v43 = vmul.f32 %v1924_v41, %v1924_v41  ;;  %v1027_v37 = vsel %vm661_vm2, %v909_v39, 0.0 }
 0x123   :  { %v841_v41 = vsel %vm661_vm2, %v1950_v61, 0.0  ;;  %v845_v61 = vsel %vm661_vm2, %v1973_v17, 0.0 }
 0x124   :  { %v818_v57 = vadd.f32 %v817_v56, %v816_v52  ;;  %v1008_v58 = vadd.f32 %v1007_v54, %v1006_v49  ;;  %v1029_v54 = vsel %vm661_vm2, %v910_v43, 0.0 }
 0x126   :  { %v1010_v59 = vadd.f32 %v1009_v60, %v1008_v58  ;;  %v820_v2 = vadd.f32 %v819_v47, %v818_v57  ;;  %v1031_v58 = vsel %vm661_vm2, %v911_v48, 0.0  ;;  %v913_v47 = vmul.f32 %v1937_v50, %v1937_v50 }
 0x127   :  { %v847_v50 = vsel %vm661_vm2, %v1961_v6, 0.0 }
 0x128   :  { %v822_v4 = vadd.f32 %v821_v8, %v820_v2  ;;  %v1012_v5 = vadd.f32 %v1011_v3, %v1010_v59  ;;  %v1033_v59 = vsel %vm661_vm2, %v912_v55, 0.0  ;;  %v914_v2 = vmul.f32 %v1973_v17, %v1973_v17 }
 0x129   :  { %v1035_v8 = vsel %vm661_vm2, %v913_v47, 0.0  ;;  %v849_v17 = vsel %vm661_vm2, %v1997_v35, 0.0 }
 0x12a   :  { %v1014_v12 = vadd.f32 %v1013_v10, %v1012_v5  ;;  %v824_v13 = vadd.f32 %v823_v63, %v822_v4  ;;  %v915_v4 = vmul.f32 %v1961_v6, %v1961_v6  ;;  %v1037_v10 = vsel %vm661_vm2, %v914_v2, 0.0 }
 0x12b   :  { %v851_v6 = vsel %vm661_vm2, %v1985_v25, 0.0 }
 0x12c   :  { %v826_v18 = vadd.f32 %v825_v26, %v824_v13  ;;  %v1016_v1 = vadd.f32 %v1015_v9, %v1014_v12  ;;  %v1039_v9 = vsel %vm661_vm2, %v915_v4, 0.0 }
 0x12e   :  { %v1018_v31 = vadd.f32 %v1017_v20, %v1016_v1  ;;  %v828_v22 = vadd.f32 %v827_v16, %v826_v18  ;;  %v1041_v1 = vsel %vm661_vm2, %v916_v11, 0.0 }
 0x130   :  { %v830_v24 = vadd.f32 %v829_v44, %v828_v22  ;;  %v1020_v29 = vadd.f32 %v1019_v27, %v1018_v31 }
 0x132   :  { %v1022_v33 = vadd.f32 %v1021_v32, %v1020_v29  ;;  %v832_v36 = vadd.f32 %v831_v34, %v830_v24 }
 0x134   :  { %v834_v45 = vadd.f32 %v833_v0, %v832_v36  ;;  %v1024_v42 = vadd.f32 %v1023_v38, %v1022_v33 }
 0x136   :  { %v1026_v46 = vadd.f32 %v1025_v40, %v1024_v42  ;;  %v836_v30 = vadd.f32 %v835_v53, %v834_v45 }
 0x138   :  { %v838_v49 = vadd.f32 %v837_v19, %v836_v30  ;;  %v1028_v52 = vadd.f32 %v1027_v37, %v1026_v46 }
 0x13a   :  { %v1030_v56 = vadd.f32 %v1029_v54, %v1028_v52  ;;  %v840_v57 = vadd.f32 %v839_v7, %v838_v49 }
 0x13c   :  { %v842_v60 = vadd.f32 %v841_v41, %v840_v57  ;;  %v1032_v62 = vadd.f32 %v1031_v58, %v1030_v56 }
 0x13e   :  { %v1034_v3 = vadd.f32 %v1033_v59, %v1032_v62  ;;  %v844_v51 = vadd.f32 %v843_v28, %v842_v60 }
 0x140   :  { %v846_v5 = vadd.f32 %v845_v61, %v844_v51  ;;  %v1036_v63 = vadd.f32 %v1035_v8, %v1034_v3 }
 0x142   :  { %v1038_v12 = vadd.f32 %v1037_v10, %v1036_v63  ;;  %v848_v13 = vadd.f32 %v847_v50, %v846_v5 }
 0x144   :  { %v850_v26 = vadd.f32 %v849_v17, %v848_v13  ;;  %v1040_v18 = vadd.f32 %v1039_v9, %v1038_v12 }
 0x146   :  { %v852_v16 = vadd.f32 %v851_v6, %v850_v26  ;;  %v1042_v20 = vadd.f32 %v1041_v1, %v1040_v18 }
 0x148   :  { %853 = vst.msk [vmem:[%s2159_s3] sm:$0xff] %vm661_vm2, %v852_v16  ;;  %v1044_v31 = vadd.f32 %v1043_v21, %v1042_v20 }
 0x14a   :  { %1045 = vst.msk [vmem:[%s2160_s4] sm:$0xff] %vm661_vm2, %v1044_v31 }

</bundles_post_ra>
